<compile_context>
chip_gen: v7x
topology: tpu7x:2x2x1
jax: 0.10.0
libtpu: 0.0.40
codegen_flags: <defaults>
</compile_context>

<pallas_src>
import functools
import math

import numpy as np
import jax
import jax.numpy as jnp
from jax.experimental import pallas as pl
from jax.experimental.pallas import tpu as pltpu

_LANE = 128
_VMEM_LIMIT = 32 * 1024 * 1024


# ----------------------------------------------------------------------------- utils
def _round_up(x, m):
    return (x + m - 1) // m * m


@functools.lru_cache(maxsize=1)
def _m_cap():
    # v7x has 2 TensorCores: split M>=512 layers into >=2 grid steps so the "parallel"
    # axis actually shards; on single-TC v5e/v6e keep one 512-row step (less overhead).
    try:
        kind = jax.devices()[0].device_kind.lower()
        if "v7" in kind or "7x" in kind:
            return 256
    except Exception:
        pass
    return 512


def _gelu(x):
    # TODO(synk): tanh-approx GELU; PyTorch nn.GELU defaults to the exact erf form
    # (max abs deviation ~1e-3 of the activation magnitude).
    c = math.sqrt(2.0 / math.pi)
    return 0.5 * x * (1.0 + jnp.tanh(c * (x + 0.044715 * x * x * x)))


def _ln_stats(x, true_c, eps):
    # Padded lanes are zero by construction, so sums over the padded width with the
    # true channel count as divisor give exact LayerNorm statistics.
    mu = jnp.sum(x, axis=-1, keepdims=True) / true_c
    var = jnp.sum(x * x, axis=-1, keepdims=True) / true_c - mu * mu
    return mu, jax.lax.rsqrt(var + eps)


# ----------------------------------------------------------------------------- generic fused matmul
#   o = post_ln( act( pre_ln(x) @ W + b ) )
# Used for: patch-embed conv (+post-LN), patch merging (+pre-LN), FPN lateral (+pre-LN),
# and the 3x3 convs (+ReLU).  Weights are pre-padded lane-dense bf16.
def _matmul_kernel(*refs, has_pre_ln, has_post_ln, has_bias, activation,
                   pre_c, post_c, eps):
    it = iter(refs)
    x_ref = next(it)
    w_ref = next(it)
    b_ref = next(it) if has_bias else None
    g1_ref = next(it) if has_pre_ln else None
    be1_ref = next(it) if has_pre_ln else None
    g2_ref = next(it) if has_post_ln else None
    be2_ref = next(it) if has_post_ln else None
    o_ref = next(it)

    x = x_ref[...]
    if has_pre_ln:
        x = x.astype(jnp.float32)
        mu, rstd = _ln_stats(x, pre_c, eps)
        x = (x - mu) * rstd * g1_ref[...] + be1_ref[...]

    acc = jnp.dot(x.astype(jnp.bfloat16), w_ref[...],
                  preferred_element_type=jnp.float32)
    if has_bias:
        acc = acc + b_ref[...]

    if activation == "relu":
        acc = jnp.maximum(acc, 0.0)
    elif activation == "gelu":
        acc = _gelu(acc)

    if has_post_ln:
        mu, rstd = _ln_stats(acc, post_c, eps)
        acc = (acc - mu) * rstd * g2_ref[...] + be2_ref[...]

    o_ref[...] = acc.astype(o_ref.dtype)


def fused_matmul(x, w_bf16, bias=None, *, pre_ln=None, post_ln=None,
                 activation="none", out_dtype=jnp.float32, eps=1e-5):
    """x:(M,K); w:(K,N) bf16 with N a multiple of 128 (pre-padded at init).
    pre_ln / post_ln: (gamma(1,·) f32, beta(1,·) f32, true_channel_count)."""
    M, K = x.shape
    N = w_bf16.shape[1]
    Mp = _round_up(max(M, 8), 8)
    cap = _m_cap()
    tm = Mp if Mp <= cap else cap
    Mp = _round_up(Mp, tm)
    xp = x if Mp == M else jnp.pad(x, ((0, Mp - M), (0, 0)))

    args = [xp, w_bf16]
    in_specs = [pl.BlockSpec((tm, K), lambda i: (i, 0)),
                pl.BlockSpec((K, N), lambda i: (0, 0))]
    if bias is not None:
        args.append(bias)
        in_specs.append(pl.BlockSpec((1, N), lambda i: (0, 0)))
    if pre_ln is not None:
        args += [pre_ln[0], pre_ln[1]]
        in_specs += [pl.BlockSpec((1, K), lambda i: (0, 0)),
                     pl.BlockSpec((1, K), lambda i: (0, 0))]
    if post_ln is not None:
        args += [post_ln[0], post_ln[1]]
        in_specs += [pl.BlockSpec((1, N), lambda i: (0, 0)),
                     pl.BlockSpec((1, N), lambda i: (0, 0))]

    out = pl.pallas_call(
        functools.partial(_matmul_kernel,
                          has_pre_ln=pre_ln is not None,
                          has_post_ln=post_ln is not None,
                          has_bias=bias is not None,
                          activation=activation,
                          pre_c=float(pre_ln[2]) if pre_ln is not None else 1.0,
                          post_c=float(post_ln[2]) if post_ln is not None else 1.0,
                          eps=eps),
        out_shape=jax.ShapeDtypeStruct((Mp, N), out_dtype),
        grid=(Mp // tm,),
        in_specs=in_specs,
        out_specs=pl.BlockSpec((tm, N), lambda i: (i, 0)),
        compiler_params=pltpu.CompilerParams(
            dimension_semantics=("parallel",),
            vmem_limit_bytes=_VMEM_LIMIT),
    )(*args)

    return out[:M] if Mp != M else out


# ----------------------------------------------------------------------------- fused attention block
# One pallas_call per image group:  x -> LN1 -> qkv -> per-head masked attention (windows
# expressed as a block-diagonal bias, lane-dense scores) -> out-proj -> + residual.
def _attn_block_kernel(x_ref, g_ref, b_ref, qkvw_ref, qkvb_ref, bias_ref,
                       pw_ref, pb_ref, o_ref, *, nh, d, cp, true_c, scale, eps):
    x = x_ref[...].astype(jnp.float32)                     # (Mg, Cp) residual stream
    mu, rstd = _ln_stats(x, true_c, eps)
    xn = (x - mu) * rstd * g_ref[...] + b_ref[...]

    qkv = jnp.dot(xn.astype(jnp.bfloat16), qkvw_ref[...],
                  preferred_element_type=jnp.float32) + qkvb_ref[...]   # (Mg, 3Cp)

    acc = x + pb_ref[...]                                  # residual + proj bias
    for h in range(nh):
        q = qkv[:, h * d:(h + 1) * d].astype(jnp.bfloat16)
        k = qkv[:, cp + h * d:cp + (h + 1) * d].astype(jnp.bfloat16)
        v = qkv[:, 2 * cp + h * d:2 * cp + (h + 1) * d].astype(jnp.bfloat16)
        s = jnp.einsum("nd,md->nm", q, k, preferred_element_type=jnp.float32)
        s = s * scale + bias_ref[h]                        # rel-pos + shift + window mask
        s = s - jnp.max(s, axis=-1, keepdims=True)
        p = jnp.exp(s)
        p = p * pl.reciprocal(jnp.sum(p, axis=-1, keepdims=True), approx=True)
        o_h = jnp.dot(p.astype(jnp.bfloat16), v, preferred_element_type=jnp.float32)
        # head-merge + out-projection fused: attn @ Wp == sum_h o_h @ Wp[h*d:(h+1)*d]
        acc = acc + jnp.dot(o_h.astype(jnp.bfloat16), pw_ref[h * d:(h + 1) * d, :],
                            preferred_element_type=jnp.float32)
    o_ref[...] = acc.astype(o_ref.dtype)


def attention_block(x2, blk, eps=1e-5):
    """x2: (Rows, Cp) f32 in window-major token order -> (Rows, Cp) f32 (residual added)."""
    rows, cp = x2.shape
    mg = blk["attn_bias"].shape[-1]                        # rows per grid step (>= 8)
    assert rows % mg == 0, (rows, mg)
    bias_shape = blk["attn_bias"].shape

    return pl.pallas_call(
        functools.partial(_attn_block_kernel, nh=blk["num_heads"], d=blk["head_dim"],
                          cp=cp, true_c=float(blk["dim"]), scale=blk["scale"], eps=eps),
        out_shape=jax.ShapeDtypeStruct((rows, cp), jnp.float32),
        grid=(rows // mg,),
        in_specs=[
            pl.BlockSpec((mg, cp), lambda i: (i, 0)),
            pl.BlockSpec((1, cp), lambda i: (0, 0)),
            pl.BlockSpec((1, cp), lambda i: (0, 0)),
            pl.BlockSpec((cp, 3 * cp), lambda i: (0, 0)),
            pl.BlockSpec((1, 3 * cp), lambda i: (0, 0)),
            pl.BlockSpec(bias_shape, lambda i: (0, 0, 0)),   # resident bias
            pl.BlockSpec((cp, cp), lambda i: (0, 0)),
            pl.BlockSpec((1, cp), lambda i: (0, 0)),
        ],
        out_specs=pl.BlockSpec((mg, cp), lambda i: (i, 0)),
        compiler_params=pltpu.CompilerParams(
            dimension_semantics=("parallel",),
            vmem_limit_bytes=_VMEM_LIMIT),
    )(x2, blk["norm1_g"], blk["norm1_b"], blk["qkv_w"], blk["qkv_b"],
      blk["attn_bias"], blk["proj_w"], blk["proj_b"])


# ----------------------------------------------------------------------------- fused MLP block
# One pallas_call:  LN2 -> fc1 -> GELU -> fc2 -> + residual  (intermediate stays in VMEM).
def _mlp_kernel(x_ref, g_ref, b_ref, w1_ref, b1_ref, w2_ref, b2_ref, o_ref, *, true_c, eps):
    x = x_ref[...].astype(jnp.float32)
    mu, rstd = _ln_stats(x, true_c, eps)
    xn = (x - mu) * rstd * g_ref[...] + b_ref[...]
    h = jnp.dot(xn.astype(jnp.bfloat16), w1_ref[...],
                preferred_element_type=jnp.float32) + b1_ref[...]
    h = _gelu(h)
    y = jnp.dot(h.astype(jnp.bfloat16), w2_ref[...],
                preferred_element_type=jnp.float32) + b2_ref[...]
    o_ref[...] = (x + y).astype(o_ref.dtype)


def fused_mlp(x2, blk, eps=1e-5):
    M, cp = x2.shape
    hidden = blk["fc1_w"].shape[1]
    Mp = _round_up(max(M, 8), 8)
    cap = _m_cap()
    tm = Mp if Mp <= cap else cap
    Mp = _round_up(Mp, tm)
    xp = x2 if Mp == M else jnp.pad(x2, ((0, Mp - M), (0, 0)))

    out = pl.pallas_call(
        functools.partial(_mlp_kernel, true_c=float(blk["dim"]), eps=eps),
        out_shape=jax.ShapeDtypeStruct((Mp, cp), jnp.float32),
        grid=(Mp // tm,),
        in_specs=[
            pl.BlockSpec((tm, cp), lambda i: (i, 0)),
            pl.BlockSpec((1, cp), lambda i: (0, 0)),
            pl.BlockSpec((1, cp), lambda i: (0, 0)),
            pl.BlockSpec((cp, hidden), lambda i: (0, 0)),
            pl.BlockSpec((1, hidden), lambda i: (0, 0)),
            pl.BlockSpec((hidden, cp), lambda i: (0, 0)),
            pl.BlockSpec((1, cp), lambda i: (0, 0)),
        ],
        out_specs=pl.BlockSpec((tm, cp), lambda i: (i, 0)),
        compiler_params=pltpu.CompilerParams(
            dimension_semantics=("parallel",),
            vmem_limit_bytes=_VMEM_LIMIT),
    )(xp, blk["norm2_g"], blk["norm2_b"], blk["fc1_w"], blk["fc1_b"],
      blk["fc2_w"], blk["fc2_b"])
    return out[:M] if Mp != M else out


# ----------------------------------------------------------------------------- swin glue (token permutations only)
def window_partition(x, ws):
    B, H, W, C = x.shape
    x = x.reshape(B, H // ws, ws, W // ws, ws, C)
    x = jnp.transpose(x, (0, 1, 3, 2, 4, 5))
    return x.reshape(-1, ws * ws, C)


def window_reverse(wins, ws, B, H, W):
    C = wins.shape[-1]
    x = wins.reshape(B, H // ws, W // ws, ws, ws, C)
    x = jnp.transpose(x, (0, 1, 3, 2, 4, 5))
    return x.reshape(B, H, W, C)


def _relative_position_index(ws):
    coords = np.stack(np.meshgrid(np.arange(ws), np.arange(ws), indexing="ij"))
    coords_flat = coords.reshape(2, -1)
    rel = coords_flat[:, :, None] - coords_flat[:, None, :]
    rel = rel.transpose(1, 2, 0).astype(np.int64)
    rel[:, :, 0] += ws - 1
    rel[:, :, 1] += ws - 1
    rel[:, :, 0] *= 2 * ws - 1
    return rel.sum(-1)                                               # (N, N)


def _shift_attn_mask(H, W, ws, shift):
    img_mask = np.zeros((1, H, W, 1), np.float32)
    cnt = 0
    for hs in (slice(0, -ws), slice(-ws, -shift), slice(-shift, None)):
        for wsl in (slice(0, -ws), slice(-ws, -shift), slice(-shift, None)):
            img_mask[:, hs, wsl, :] = cnt
            cnt += 1
    m = img_mask.reshape(1, H // ws, ws, W // ws, ws, 1)
    m = m.transpose(0, 1, 3, 2, 4, 5).reshape(-1, ws * ws)
    diff = m[:, None, :] - m[:, :, None]
    return np.where(diff != 0, -100.0, 0.0).astype(np.float32)       # (nW, N, N)


def upsample2x_nearest(x):
    B, H, W, C = x.shape
    x = jnp.broadcast_to(x[:, :, None, :, None, :], (B, H, 2, W, 2, C))
    return x.reshape(B, 2 * H, 2 * W, C)


# ----------------------------------------------------------------------------- swin block / stage
def swin_block_forward(x, H, W, blk):
    B, L, Cp = x.shape
    ws, shift = blk["ws"], blk["shift"]

    if (ws < H) or (ws < W) or (shift > 0):
        h = x.reshape(B, H, W, Cp)
        if shift > 0:
            h = jnp.roll(h, shift=(-shift, -shift), axis=(1, 2))
        hw = window_partition(h, ws)                                 # (B*nW, N, Cp)
        # residual add commutes with the (roll + partition) permutation -> fused in-kernel
        y = attention_block(hw.reshape(-1, Cp), blk)
        y = window_reverse(y.reshape(hw.shape), ws, B, H, W)
        if shift > 0:
            y = jnp.roll(y, shift=(shift, shift), axis=(1, 2))
        x = y.reshape(B, L, Cp)
    else:
        # ws == H == W: window partition is the identity token ordering
        x = attention_block(x.reshape(B * L, Cp), blk).reshape(B, L, Cp)

    y = fused_mlp(x.reshape(B * L, Cp), blk)
    return y.reshape(B, L, Cp)


def patch_merging(x, H, W, p):
    B, L, Cp = x.shape
    xi = x.reshape(B, H, W, Cp)
    x0 = xi[:, 0::2, 0::2, :]
    x1 = xi[:, 1::2, 0::2, :]
    x2 = xi[:, 0::2, 1::2, :]
    x3 = xi[:, 1::2, 1::2, :]
    xc = jnp.concatenate([x0, x1, x2, x3], axis=-1).reshape(B * (H // 2) * (W // 2), 4 * Cp)
    y = fused_matmul(xc, p["red_w"], None,
                     pre_ln=(p["norm_g"], p["norm_b"], p["true_c"]))
    return y.reshape(B, (H // 2) * (W // 2), -1)


def swin_forward_features(x_nchw, p):
    B = x_nchw.shape[0]
    x = jnp.transpose(x_nchw, (0, 2, 3, 1))                          # -> NHWC
    ps = p["patch_size"]
    _, Hh, Ww, Cin = x.shape
    Ho, Wo = Hh // ps, Ww // ps
    # non-overlapping patchify; (dy, dx, cin) ordering matches the flattened conv weight
    patches = x.reshape(B, Ho, ps, Wo, ps, Cin).transpose(0, 1, 3, 2, 4, 5)
    patches = patches.reshape(B * Ho * Wo, ps * ps * Cin).astype(jnp.bfloat16)
    # patch-embed conv + bias + LayerNorm fused into one kernel (post-LN epilogue)
    tok = fused_matmul(patches, p["patch_embed_w"], p["patch_embed_b"],
                       post_ln=(p["pe_norm_g"], p["pe_norm_b"], p["embed_dim"]))
    H, W = Ho, Wo
    x = tok.reshape(B, H * W, -1)

    outs = []
    for stage in p["stages"]:
        for blk in stage["blocks"]:
            x = swin_block_forward(x, H, W, blk)
        # stage-output LayerNorm fused into the FPN lateral 1x1 conv downstream
        outs.append((x, H, W, stage["out_norm_g"], stage["out_norm_b"], stage["dim"]))
        if stage["downsample"] is not None:
            x = patch_merging(x, H, W, stage["downsample"])
            H, W = H // 2, W // 2
    return outs


# ----------------------------------------------------------------------------- convs on 128-ch padded maps
def conv3x3(x, w_flat, b, activation="none"):
    """x: (B,H,W,Cp) with Cp multiple of 128; w_flat: (9*Cp, Cp) bf16; pad=1, stride=1."""
    B, H, W, C = x.shape
    xp = jnp.pad(x, ((0, 0), (1, 1), (1, 1), (0, 0)))
    # TODO(synk): the 9-tap im2col could be fed via a K-grid axis instead of a concat;
    # at 16x16 resolution the materialized patches are tiny so kept as XLA glue.
    patches = [xp[:, dy:dy + H, dx:dx + W, :] for dy in range(3) for dx in range(3)]
    patches = jnp.concatenate(patches, axis=-1).reshape(B * H * W, 9 * C).astype(jnp.bfloat16)
    out = fused_matmul(patches, w_flat, b, activation=activation)
    return out.reshape(B, H, W, -1)


# ----------------------------------------------------------------------------- full FeatureExtraction forward
def feature_extraction_forward(x_nchw, params):
    feats = swin_forward_features(x_nchw, params)

    # FPN laterals: stage out-norm + 1x1 conv fused; output stays 128-ch padded (lane dense)
    laterals = []
    for (tok, H, W, ong, onb, dim), lp in zip(feats, params["fpn_lateral"]):
        B, L, Cp = tok.shape
        lat = fused_matmul(tok.reshape(B * L, Cp), lp["w"], lp["b"],
                           pre_ln=(ong, onb, dim))
        laterals.append(lat.reshape(B, H, W, -1))

    # top-down pathway: nearest 2x upsample (reshape+broadcast) + add, all 128-ch padded
    for i in range(len(laterals) - 1, 0, -1):
        laterals[i - 1] = laterals[i - 1] + upsample2x_nearest(laterals[i])

    # Only pyramid level 0 feeds the module output, so only its 3x3 smooth conv is computed.
    y = conv3x3(laterals[0], params["fpn_smooth0_w"], params["fpn_smooth0_b"])
    y = conv3x3(y, params["final0_w"], params["final0_b"], activation="relu")
    y = conv3x3(y, params["final1_w"], params["final1_b"], activation="relu")
    y = y[..., :params["out_channels"]]                              # single slice at the end
    return jnp.transpose(y, (0, 3, 1, 2))                            # back to NCHW


# ----------------------------------------------------------------------------- deterministic parameter init
class _KeyGen:
    def __init__(self, key):
        self.key = key

    def __call__(self):
        self.key, sub = jax.random.split(self.key)
        return sub


def _randn(kg, shape, std=0.02):
    return np.asarray(jax.random.normal(kg(), shape, jnp.float32)) * std


def _ln_pair(c, cp):
    g = np.zeros((1, cp), np.float32)
    g[0, :c] = 1.0
    return jnp.asarray(g), jnp.zeros((1, cp), jnp.float32)


def init_params(key, *, in_channels=3, out_channels=32, embed_dim=96,
                depths=(2, 2, 6, 2), num_heads=(3, 6, 12, 24),
                window_size=4, mlp_ratio=4, img_hw=(64, 64), patch_size=4):
    kg = _KeyGen(key)
    p = {"patch_size": patch_size, "out_channels": out_channels, "embed_dim": embed_dim}

    cp0 = _round_up(embed_dim, _LANE)
    kpe = patch_size * patch_size * in_channels
    wpe = np.zeros((kpe, cp0), np.float32)
    wpe[:, :embed_dim] = _randn(kg, (kpe, embed_dim))
    p["patch_embed_w"] = jnp.asarray(wpe, jnp.bfloat16)
    p["patch_embed_b"] = jnp.zeros((1, cp0), jnp.float32)
    p["pe_norm_g"], p["pe_norm_b"] = _ln_pair(embed_dim, cp0)

    H, W = img_hw[0] // patch_size, img_hw[1] // patch_size
    stages = []
    for i, depth in enumerate(depths):
        C = embed_dim * (2 ** i)
        Cp = _round_up(C, _LANE)
        nh = num_heads[i]
        d = C // nh
        hidden = mlp_ratio * C
        blocks = []
        for j in range(depth):
            ws = window_size
            shift = 0 if (j % 2 == 0) else window_size // 2
            if min(H, W) <= ws:                                      # Swin rule: clamp window, disable shift
                ws = min(H, W)
                shift = 0
            N = ws * ws
            nW = (H // ws) * (W // ws)
            m_img = nW * N
            group = 1 if m_img % 8 == 0 else max(1, 8 // m_img)      # keep block rows a multiple of 8
            mg = group * m_img

            # Precompute the block-diagonal (over windows / grouped images) attention bias:
            # rel-pos bias (+ shift mask) inside window blocks, -1e9 for cross-window pairs.
            table = _randn(kg, ((2 * ws - 1) ** 2, nh))
            rpi = _relative_position_index(ws)
            rel = table[rpi.reshape(-1)].reshape(N, N, nh).transpose(2, 0, 1)   # (nh, N, N)
            mask = _shift_attn_mask(H, W, ws, shift) if shift > 0 else None     # (nW, N, N)
            big = np.full((nh, mg, mg), -1e9, np.float32)
            for gi in range(group):
                for wi in range(nW):
                    r0 = gi * m_img + wi * N
                    blkb = rel if mask is None else rel + mask[wi][None]
                    big[:, r0:r0 + N, r0:r0 + N] = blkb

            # qkv weight: (Cp, 3Cp) with q/k/v each lane-aligned at multiples of Cp, zero pads
            wq = _randn(kg, (C, 3, C))
            qkvw = np.zeros((Cp, 3, Cp), np.float32)
            qkvw[:C, :, :C] = wq
            projw = np.zeros((Cp, Cp), np.float32)
            projw[:C, :C] = _randn(kg, (C, C))
            fc1 = np.zeros((Cp, hidden), np.float32)
            fc1[:C] = _randn(kg, (C, hidden))
            fc2 = np.zeros((hidden, Cp), np.float32)
            fc2[:, :C] = _randn(kg, (hidden, C))

            n1g, n1b = _ln_pair(C, Cp)
            n2g, n2b = _ln_pair(C, Cp)
            blocks.append(dict(
                ws=ws, shift=shift, num_heads=nh, head_dim=d, dim=C, cp=Cp,
                scale=float(d) ** -0.5,
                norm1_g=n1g, norm1_b=n1b,
                qkv_w=jnp.asarray(qkvw.reshape(Cp, 3 * Cp), jnp.bfloat16),
                qkv_b=jnp.zeros((1, 3 * Cp), jnp.float32),
                attn_bias=jnp.asarray(big),
                proj_w=jnp.asarray(projw, jnp.bfloat16),
                proj_b=jnp.zeros((1, Cp), jnp.float32),
                norm2_g=n2g, norm2_b=n2b,
                fc1_w=jnp.asarray(fc1, jnp.bfloat16),
                fc1_b=jnp.zeros((1, hidden), jnp.float32),
                fc2_w=jnp.asarray(fc2, jnp.bfloat16),
                fc2_b=jnp.zeros((1, Cp), jnp.float32),
            ))

        ong, onb = _ln_pair(C, Cp)
        stage = dict(blocks=blocks, out_norm_g=ong, out_norm_b=onb, dim=C)
        if i < len(depths) - 1:
            C2 = 2 * C
            Cp2 = _round_up(C2, _LANE)
            red = _randn(kg, (4, C, C2))
            redp = np.zeros((4, Cp, Cp2), np.float32)
            redp[:, :C, :C2] = red
            mgam = np.zeros((1, 4 * Cp), np.float32)
            for s4 in range(4):
                mgam[0, s4 * Cp:s4 * Cp + C] = 1.0
            stage["downsample"] = dict(
                norm_g=jnp.asarray(mgam),
                norm_b=jnp.zeros((1, 4 * Cp), jnp.float32),
                red_w=jnp.asarray(redp.reshape(4 * Cp, Cp2), jnp.bfloat16),
                true_c=float(4 * C))
            H, W = H // 2, W // 2
        else:
            stage["downsample"] = None
        stages.append(stage)
    p["stages"] = stages

    # FPN + final convs, all pre-padded to 128 output channels (lane-dense tail)
    op = _round_up(out_channels, _LANE)
    in_dims = [embed_dim * (2 ** i) for i in range(len(depths))]
    p["fpn_lateral"] = []
    for c in in_dims:
        cpin = _round_up(c, _LANE)
        w = np.zeros((cpin, op), np.float32)
        w[:c, :out_channels] = _randn(kg, (c, out_channels))
        p["fpn_lateral"].append(dict(w=jnp.asarray(w, jnp.bfloat16),
                                     b=jnp.zeros((1, op), jnp.float32)))

    def conv3_w():
        w = np.zeros((3, 3, op, op), np.float32)
        w[:, :, :out_channels, :out_channels] = _randn(kg, (3, 3, out_channels, out_channels))
        return jnp.asarray(w.reshape(9 * op, op), jnp.bfloat16)

    p["fpn_smooth0_w"], p["fpn_smooth0_b"] = conv3_w(), jnp.zeros((1, op), jnp.float32)
    p["final0_w"], p["final0_b"] = conv3_w(), jnp.zeros((1, op), jnp.float32)
    p["final1_w"], p["final1_b"] = conv3_w(), jnp.zeros((1, op), jnp.float32)
    return p


# ----------------------------------------------------------------------------- main
if __name__ == "__main__":
    # Architecture-consistent small shapes: 64x64 RGB, patch 4 -> token grids
    # 16x16 / 8x8 / 4x4 / 2x2 with dims 96/192/384/768 (window_size=4 for small inputs).
    B, Cin, Himg, Wimg = 2, 3, 64, 64
    x = jax.random.normal(jax.random.PRNGKey(0), (B, Cin, Himg, Wimg), jnp.float32)

    params = init_params(jax.random.PRNGKey(1), in_channels=Cin, out_channels=32,
                         img_hw=(Himg, Wimg), window_size=4)

    out = feature_extraction_forward(x, params)
    out = jax.block_until_ready(out)

    assert out.shape == (B, 32, Himg // 4, Wimg // 4), out.shape
    assert bool(jnp.all(jnp.isfinite(out)))
    print("KERNEL_OK")
</pallas_src>

<mosaic_0001>
module attributes {stable_mosaic.version = 11 : i64} {
  func.func @_matmul_kernel(%arg0: i32, %arg1: memref<512x48xbf16, #tpu.memory_space<vmem>>, %arg2: memref<48x128xbf16, #tpu.memory_space<vmem>>, %arg3: memref<1x128xf32, #tpu.memory_space<vmem>>, %arg4: memref<1x128xf32, #tpu.memory_space<vmem>>, %arg5: memref<1x128xf32, #tpu.memory_space<vmem>>, %arg6: memref<512x128xf32, #tpu.memory_space<vmem>>) attributes {dimension_semantics = [#tpu.dimension_semantics<parallel>], iteration_bounds = array<i64: 1>, scalar_prefetch = 0 : i64, scratch_operands = 0 : i64, tpu.core_type = #tpu.core_type<tc>, window_params = [{transform_indices = @transform_0, window_bounds = array<i64: 512, 48>}, {pipeline_mode = #tpu.pipeline_mode<synchronous>, transform_indices = @transform_1, window_bounds = array<i64: 48, 128>}, {pipeline_mode = #tpu.pipeline_mode<synchronous>, transform_indices = @transform_2, window_bounds = array<i64: 1, 128>}, {pipeline_mode = #tpu.pipeline_mode<synchronous>, transform_indices = @transform_3, window_bounds = array<i64: 1, 128>}, {pipeline_mode = #tpu.pipeline_mode<synchronous>, transform_indices = @transform_4, window_bounds = array<i64: 1, 128>}, {transform_indices = @transform_5, window_bounds = array<i64: 512, 128>}]} {
    %c0 = arith.constant 0 : index
    %c0_0 = arith.constant 0 : index
    %0 = vector.load %arg1[%c0, %c0_0] : memref<512x48xbf16, #tpu.memory_space<vmem>>, vector<512x48xbf16>
    %c0_1 = arith.constant 0 : index
    %c0_2 = arith.constant 0 : index
    %1 = vector.load %arg2[%c0_1, %c0_2] : memref<48x128xbf16, #tpu.memory_space<vmem>>, vector<48x128xbf16>
    %cst = arith.constant dense<0.000000e+00> : vector<512x128xf32>
    %2 = tpu.matmul %0, %1, %cst {dimension_numbers = #tpu.dot_dimension_numbers<[1], [0], [0], [1], [0, 0, 1, 1], [], []>} : vector<512x48xbf16>, vector<48x128xbf16>, vector<512x128xf32> -> vector<512x128xf32>
    %c0_3 = arith.constant 0 : index
    %c0_4 = arith.constant 0 : index
    %3 = vector.load %arg3[%c0_3, %c0_4] : memref<1x128xf32, #tpu.memory_space<vmem>>, vector<1x128xf32>
    %4 = vector.broadcast %3 : vector<1x128xf32> to vector<512x128xf32>
    %5 = arith.addf %2, %4 : vector<512x128xf32>
    %cst_5 = arith.constant dense<0.000000e+00> : vector<512xf32>
    %6 = vector.multi_reduction <add>, %5, %cst_5 [1] : vector<512x128xf32> to vector<512xf32>
    %7 = vector.shape_cast %6 : vector<512xf32> to vector<512x1xf32>
    %cst_6 = arith.constant 9.600000e+01 : f32
    %8 = vector.broadcast %cst_6 : f32 to vector<512x1xf32>
    %9 = arith.divf %7, %8 : vector<512x1xf32>
    %10 = arith.mulf %5, %5 : vector<512x128xf32>
    %cst_7 = arith.constant dense<0.000000e+00> : vector<512xf32>
    %11 = vector.multi_reduction <add>, %10, %cst_7 [1] : vector<512x128xf32> to vector<512xf32>
    %12 = vector.shape_cast %11 : vector<512xf32> to vector<512x1xf32>
    %cst_8 = arith.constant 9.600000e+01 : f32
    %13 = vector.broadcast %cst_8 : f32 to vector<512x1xf32>
    %14 = arith.divf %12, %13 : vector<512x1xf32>
    %15 = arith.mulf %9, %9 : vector<512x1xf32>
    %16 = arith.subf %14, %15 : vector<512x1xf32>
    %cst_9 = arith.constant 9.99999974E-6 : f32
    %17 = vector.broadcast %cst_9 : f32 to vector<512x1xf32>
    %18 = arith.addf %16, %17 : vector<512x1xf32>
    %19 = math.rsqrt %18 : vector<512x1xf32>
    %20 = vector.broadcast %9 : vector<512x1xf32> to vector<512x128xf32>
    %21 = arith.subf %5, %20 : vector<512x128xf32>
    %22 = vector.broadcast %19 : vector<512x1xf32> to vector<512x128xf32>
    %23 = arith.mulf %21, %22 : vector<512x128xf32>
    %c0_10 = arith.constant 0 : index
    %c0_11 = arith.constant 0 : index
    %24 = vector.load %arg4[%c0_10, %c0_11] : memref<1x128xf32, #tpu.memory_space<vmem>>, vector<1x128xf32>
    %25 = vector.broadcast %24 : vector<1x128xf32> to vector<512x128xf32>
    %26 = arith.mulf %23, %25 : vector<512x128xf32>
    %c0_12 = arith.constant 0 : index
    %c0_13 = arith.constant 0 : index
    %27 = vector.load %arg5[%c0_12, %c0_13] : memref<1x128xf32, #tpu.memory_space<vmem>>, vector<1x128xf32>
    %28 = vector.broadcast %27 : vector<1x128xf32> to vector<512x128xf32>
    %29 = arith.addf %26, %28 : vector<512x128xf32>
    %c0_14 = arith.constant 0 : index
    %c0_15 = arith.constant 0 : index
    %30 = vector.load %arg6[%c0_14, %c0_15] : memref<512x128xf32, #tpu.memory_space<vmem>>, vector<512x128xf32>
    tpu.vector_store %arg6[%c0_14, %c0_15], %29 {strides = array<i32>} : memref<512x128xf32, #tpu.memory_space<vmem>>, vector<512x128xf32>,
    return
  }
  func.func @transform_0(%arg0: i32) -> (i32, i32) {
    %c0_i32 = arith.constant 0 : i32
    %c0_i32_0 = arith.constant 0 : i32
    return %arg0, %c0_i32 : i32, i32
  }
  func.func @transform_1(%arg0: i32) -> (i32, i32) {
    %c0_i32 = arith.constant 0 : i32
    %c0_i32_0 = arith.constant 0 : i32
    %c0_i32_1 = arith.constant 0 : i32
    return %c0_i32, %c0_i32_0 : i32, i32
  }
  func.func @transform_2(%arg0: i32) -> (i32, i32) {
    %c0_i32 = arith.constant 0 : i32
    %c0_i32_0 = arith.constant 0 : i32
    %c0_i32_1 = arith.constant 0 : i32
    return %c0_i32, %c0_i32_0 : i32, i32
  }
  func.func @transform_3(%arg0: i32) -> (i32, i32) {
    %c0_i32 = arith.constant 0 : i32
    %c0_i32_0 = arith.constant 0 : i32
    %c0_i32_1 = arith.constant 0 : i32
    return %c0_i32, %c0_i32_0 : i32, i32
  }
  func.func @transform_4(%arg0: i32) -> (i32, i32) {
    %c0_i32 = arith.constant 0 : i32
    %c0_i32_0 = arith.constant 0 : i32
    %c0_i32_1 = arith.constant 0 : i32
    return %c0_i32, %c0_i32_0 : i32, i32
  }
  func.func @transform_5(%arg0: i32) -> (i32, i32) {
    %c0_i32 = arith.constant 0 : i32
    %c0_i32_0 = arith.constant 0 : i32
    return %arg0, %c0_i32 : i32, i32
  }
}

</mosaic_0001>

<bundles_post_ra>
// kernel: tpu_custom_call.1
= control target key start
LH: loop header
LB: loop body
LE: loop exit
PB: predicated region body
PF: predicated region fallthrough
CT: control target
= control target key end

     0   :  { %vm277_vm0 = vcmask 392192   ;;  %s3368_s0 = inlined_call_operand.vmem [shape: bf16[512,48], index: 0, kind: input, shape index: {}]   ;;  %s3369_s1 = inlined_call_operand.vmem [shape: bf16[48,128], index: 1, kind: input, shape index: {}]   ;;  %s3370_s2 = inlined_call_operand.vmem [shape: f32[1,128], index: 2, kind: input, shape index: {}]   ;;  %s3371_s3 = inlined_call_operand.vmem [shape: f32[1,128], index: 3, kind: input, shape index: {}]   ;;  %s3372_s4 = inlined_call_operand.vmem [shape: f32[1,128], index: 4, kind: input, shape index: {}]   ;;  %s3373_s5 = inlined_call_operand.hbm [shape: f32[512,128], index: 5, kind: output, shape index: {}]  }
   0x1   :  { %v1902_v0 = vld [vmem:[%s3369_s1] sm:$0xff]   ;;  %v1903_v1 = vld [vmem:[%s3369_s1 + $0x8] sm:$0xff]   ;;  %v1904_v2 = vld [vmem:[%s3369_s1 + $0x10] sm:$0xff]  }
   0x2   :  { %1823 = vmatprep.subr.bf16.mxu0 %v1902_v0  ;;  %1893 = vmatprep.subr.bf16.mxu1 %v1902_v0  ;;  %v1905_v3 = vld [vmem:[%s3368_s0] sm:$0xff]   ;;  %v1907_v5 = vld [vmem:[%s3368_s0 + $0x8] sm:$0xff]   ;;  %v1909_v7 = vld [vmem:[%s3368_s0 + $0x10] sm:$0xff]  }
   0x3   :  { %1824 = vmatpush3.bf16.msra.mxu0 %v1902_v0  ;;  %1896 = vmatpush3.bf16.msra.mxu1 %v1902_v0  ;;  %v1906_v4 = vld [vmem:[%s3368_s0 + $0x80] sm:$0xff]   ;;  %v1908_v6 = vld [vmem:[%s3368_s0 + $0x88] sm:$0xff]   ;;  %v1911_v8 = vld [vmem:[%s3368_s0 + $0x90] sm:$0xff]  }
   0x4   :  { %1825 = vmatprep.subr.bf16.mxu0 %v1903_v1  ;;  %1894 = vmatprep.subr.bf16.mxu1 %v1903_v1  ;;  %v1910_v9 = vld [vmem:[%s3368_s0 + $0x18] sm:$0xff]   ;;  %v1913_v11 = vld [vmem:[%s3368_s0 + $0x20] sm:$0xff]   ;;  %v1914_v13 = vld [vmem:[%s3368_s0 + $0x28] sm:$0xff]  }
   0x5   :  { %1829 = vmatprep.mubr.msk.bf16.mxu0 %vm277_vm0, %v1905_v3  ;;  %1861 = vmatprep.mubr.msk.bf16.mxu1 %vm277_vm0, %v1906_v4  ;;  %v1912_v10 = vld [vmem:[%s3368_s0 + $0x98] sm:$0xff]   ;;  %v1915_v12 = vld [vmem:[%s3368_s0 + $0xa0] sm:$0xff]   ;;  %v1916_v14 = vld [vmem:[%s3368_s0 + $0xa8] sm:$0xff]  }
   0x6   :  { %v1917_v15 = vld [vmem:[%s3368_s0 + $0x30] sm:$0xff]  }
   0x7   :  { %1826 = vmatpush3.bf16.msra.mxu0 %v1903_v1  ;;  %1897 = vmatpush3.bf16.msra.mxu1 %v1903_v1  ;;  %v1919_v16 = vld [vmem:[%s3368_s0 + $0xb0] sm:$0xff]  }
   0x8   :  { %1827 = vmatprep.subr.bf16.mxu0 %v1904_v2  ;;  %1895 = vmatprep.subr.bf16.mxu1 %v1904_v2 }
   0xb   :  { %1828 = vmatpush3.bf16.msra.mxu0 %v1904_v2  ;;  %1898 = vmatpush3.bf16.msra.mxu1 %v1904_v2 }
   0xe   :  { %1830 = vmatmul.mubr.msk.bf16.vlgmr.msra.gmra.mrb[0].mxu0 %vm277_vm0, %v1907_v5  ;;  %1862 = vmatmul.mubr.msk.bf16.vlgmr.msra.gmra.mrb[0].mxu1 %vm277_vm0, %v1908_v6 }
   0xf   :  { %1833 = vmatprep.mubr.msk.bf16.mxu0 %vm277_vm0, %v1909_v7  ;;  %1865 = vmatprep.mubr.msk.bf16.mxu1 %vm277_vm0, %v1911_v8 }
  0x16   :  { %1834 = vmatmul.mubr.msk.bf16.gmra.mrb[4].mxu0 %vm277_vm0, %v1910_v9  ;;  %1866 = vmatmul.mubr.msk.bf16.gmra.mrb[4].mxu1 %vm277_vm0, %v1912_v10 }
  0x17   :  { %1837 = vmatprep.mubr.msk.bf16.mxu0 %vm277_vm0, %v1913_v11  ;;  %1869 = vmatprep.mubr.msk.bf16.mxu1 %vm277_vm0, %v1915_v12 }
  0x1e   :  { %1838 = vmatmul.mubr.msk.bf16.gmra.mrb[8].mxu0 %vm277_vm0, %v1914_v13  ;;  %1870 = vmatmul.mubr.msk.bf16.gmra.mrb[8].mxu1 %vm277_vm0, %v1916_v14 }
  0x1f   :  { %1841 = vmatprep.mubr.msk.bf16.mxu0 %vm277_vm0, %v1917_v15  ;;  %1873 = vmatprep.mubr.msk.bf16.mxu1 %vm277_vm0, %v1919_v16 }
  0x20   :  { %10 = vsyncpa [#allocation3], 0  ;;  %v1918_v17 = vld [vmem:[%s3368_s0 + $0x38] sm:$0xff]   ;;  %v1921_v19 = vld [vmem:[%s3368_s0 + $0x40] sm:$0xff]  }
  0x21   :  { %v1920_v18 = vld [vmem:[%s3368_s0 + $0xb8] sm:$0xff]   ;;  %v1923_v20 = vld [vmem:[%s3368_s0 + $0xc0] sm:$0xff]   ;;  %v1922_v21 = vld [vmem:[%s3368_s0 + $0x48] sm:$0xff]  }
  0x22   :  { %v1924_v22 = vld [vmem:[%s3368_s0 + $0xc8] sm:$0xff]   ;;  %v1925_v23 = vld [vmem:[%s3368_s0 + $0x50] sm:$0xff]   ;;  %v1926_v25 = vld [vmem:[%s3368_s0 + $0x58] sm:$0xff]  }
  0x23   :  { %v1927_v24 = vld [vmem:[%s3368_s0 + $0xd0] sm:$0xff]   ;;  %v1928_v26 = vld [vmem:[%s3368_s0 + $0xd8] sm:$0xff]   ;;  %v1929_v27 = vld [vmem:[%s3368_s0 + $0x60] sm:$0xff]  }
  0x24   :  { %v1931_v28 = vld [vmem:[%s3368_s0 + $0xe0] sm:$0xff]   ;;  %v1930_v29 = vld [vmem:[%s3368_s0 + $0x68] sm:$0xff]   ;;  %v1933_v31 = vld [vmem:[%s3368_s0 + $0x70] sm:$0xff]  }
  0x25   :  { %v1932_v30 = vld [vmem:[%s3368_s0 + $0xe8] sm:$0xff]   ;;  %v1934_v32 = vld [vmem:[%s3368_s0 + $0x78] sm:$0xff]   ;;  %v1935_v33 = vld [vmem:[%s3368_s0 + $0xf0] sm:$0xff]  }
  0x26   :  { %1842 = vmatmul.mubr.msk.bf16.gmra.mrb[12].mxu0 %vm277_vm0, %v1918_v17  ;;  %1874 = vmatmul.mubr.msk.bf16.gmra.mrb[12].mxu1 %vm277_vm0, %v1920_v18  ;;  %v1936_v34 = vld [vmem:[%s3368_s0 + $0xf8] sm:$0xff]   ;;  %v2265_v35 = vld [vmem:[%s3370_s2] ss:$0 sm:$0xff] }
  0x27   :  { %1845 = vmatprep.mubr.msk.bf16.mxu0 %vm277_vm0, %v1921_v19  ;;  %1877 = vmatprep.mubr.msk.bf16.mxu1 %vm277_vm0, %v1923_v20 }
  0x2e   :  { %1846 = vmatmul.mubr.msk.bf16.gmra.mrb[16].mxu0 %vm277_vm0, %v1922_v21  ;;  %1878 = vmatmul.mubr.msk.bf16.gmra.mrb[16].mxu1 %vm277_vm0, %v1924_v22 }
  0x2f   :  { %1849 = vmatprep.mubr.msk.bf16.mxu0 %vm277_vm0, %v1925_v23  ;;  %1881 = vmatprep.mubr.msk.bf16.mxu1 %vm277_vm0, %v1927_v24 }
  0x36   :  { %1850 = vmatmul.mubr.msk.bf16.gmra.mrb[20].mxu0 %vm277_vm0, %v1926_v25  ;;  %1882 = vmatmul.mubr.msk.bf16.gmra.mrb[20].mxu1 %vm277_vm0, %v1928_v26 }
  0x37   :  { %1853 = vmatprep.mubr.msk.bf16.mxu0 %vm277_vm0, %v1929_v27  ;;  %1885 = vmatprep.mubr.msk.bf16.mxu1 %vm277_vm0, %v1931_v28 }
  0x3e   :  { %1854 = vmatmul.mubr.msk.bf16.gmra.mrb[24].mxu0 %vm277_vm0, %v1930_v29  ;;  %1886 = vmatmul.mubr.msk.bf16.gmra.mrb[24].mxu1 %vm277_vm0, %v1932_v30 }
  0x3f   :  { %1857 = vmatprep.mubr.msk.bf16.mxu0 %vm277_vm0, %v1933_v31  ;;  %1889 = vmatprep.mubr.msk.bf16.mxu1 %vm277_vm0, %v1935_v33 }
  0x46   :  { %1858 = vmatmul.mubr.msk.bf16.gmra.mrb[28].mxu0 %vm277_vm0, %v1934_v32  ;;  %1890 = vmatmul.mubr.msk.bf16.gmra.mrb[28].mxu1 %vm277_vm0, %v1936_v34 }
  0xe1   :  { %v1831_v36 = vpop.f32.mrb[0].mxu0  ;;  %v1863_v37 = vpop.f32.mrb[0].mxu1 }
  0xe2   :  { %v2268_v38 = vadd.f32 %v1831_v36, %v2265_v35  ;;  %v2271_v39 = vadd.f32 %v1863_v37, %v2265_v35  ;;  %v408_v40 = vpop.f32.mrb[1].mxu0  ;;  %v536_v41 = vpop.f32.mrb[1].mxu1 }
  0xe3   :  { %v1832_v42 = vpop.f32.mrb[2].mxu0  ;;  %v1864_v43 = vpop.f32.mrb[2].mxu1  ;;  %v2276_v46 = vadd.f32 %v2265_v35, %v408_v40  ;;  %v2284_v50 = vadd.f32 %v2265_v35, %v536_v41 }
  0xe4   :  { %731 = vadd.xlane.f32.xlu0 %v2271_v39  ;;  %v539_v44 = vpop.f32.mrb[3].mxu1  ;;  %667 = vadd.xlane.f32.xlu1 %v2268_v38  ;;  %v411_v45 = vpop.f32.mrb[3].mxu0  ;;  %v2279_v47 = vadd.f32 %v1832_v42, %v2265_v35  ;;  %v2287_v51 = vadd.f32 %v1864_v43, %v2265_v35  ;;  %v858_v59 = vmul.f32 %v2268_v38, %v2268_v38 }
  0xe5   :  { %v2296_v58 = vadd.f32 %v2265_v35, %v539_v44  ;;  %v890_v63 = vmul.f32 %v2271_v39, %v2271_v39  ;;  %v2322_v6 = vadd.f32 %v2265_v35, %v411_v45  ;;  %v856_v11 = vmul.f32 %v2276_v46, %v2276_v46 }
  0xe6   :  { %v859_v62 = vmul.f32 %v2279_v47, %v2279_v47  ;;  %v891_v7 = vmul.f32 %v2287_v51, %v2287_v51  ;;  %v888_v19 = vmul.f32 %v2284_v50, %v2284_v50 }
  0xe7   :  { %v857_v10 = vmul.f32 %v2322_v6, %v2322_v6  ;;  %v889_v18 = vmul.f32 %v2296_v58, %v2296_v58 }
  0xe8   :  { %669 = vadd.xlane.f32.xlu1 %v2279_v47  ;;  %663 = vadd.xlane.f32.xlu0 %v2276_v46 }
  0xe9   :  { %v1835_v48 = vpop.f32.mrb[4].mxu0  ;;  %v1867_v49 = vpop.f32.mrb[4].mxu1 }
  0xea   :  { %v424_v52 = vpop.f32.mrb[5].mxu0  ;;  %v2289_v53 = vpop.f32.mrb[5].mxu1  ;;  %v2356_v22 = vadd.f32 %v1835_v48, %v2265_v35  ;;  %v2376_v30 = vadd.f32 %v1867_v49, %v2265_v35 }
  0xeb   :  { %v1836_v54 = vpop.f32.mrb[6].mxu0  ;;  %v1868_v55 = vpop.f32.mrb[6].mxu1  ;;  %v2388_v34 = vadd.f32 %v2265_v35, %v424_v52  ;;  %v2409_v45 = vadd.f32 %v2265_v35, %v2289_v53 }
  0xec   :  { %733 = vadd.xlane.f32.xlu1 %v2287_v51  ;;  %727 = vadd.xlane.f32.xlu0 %v2284_v50  ;;  %v427_v56 = vpop.f32.mrb[7].mxu0  ;;  %v2293_v57 = vpop.f32.mrb[7].mxu1  ;;  %v2359_v23 = vadd.f32 %v1836_v54, %v2265_v35  ;;  %v2379_v31 = vadd.f32 %v1868_v55, %v2265_v35  ;;  %v862_v52 = vmul.f32 %v2356_v22, %v2356_v22 }
  0xed   :  { %v2391_v36 = vadd.f32 %v2265_v35, %v427_v56  ;;  %v2413_v48 = vadd.f32 %v2265_v35, %v2293_v57  ;;  %v894_v54 = vmul.f32 %v2376_v30, %v2376_v30  ;;  %v860_v56 = vmul.f32 %v2388_v34, %v2388_v34 }
  0xee   :  { %v863_v49 = vmul.f32 %v2359_v23, %v2359_v23  ;;  %v895_v53 = vmul.f32 %v2379_v31, %v2379_v31 }
  0xef   :  { %v861_v55 = vmul.f32 %v2391_v36, %v2391_v36 }
  0xf0   :  { %729 = vadd.xlane.f32.xlu1 %v2296_v58  ;;  %924 = vadd.xlane.f32.xlu0 %v858_v59  ;;  %v893_v59 = vmul.f32 %v2413_v48, %v2413_v48 }
  0xf1   :  { %v2301_v60 = vpop.f32.mrb[8].mxu0  ;;  %v2303_v61 = vpop.f32.mrb[8].mxu1 }
  0xf2   :  { %v2309_v0 = vpop.f32.mrb[9].mxu0  ;;  %v2311_v1 = vpop.f32.mrb[9].mxu1 }
  0xf3   :  { %v2313_v2 = vpop.f32.mrb[10].mxu0  ;;  %v2315_v3 = vpop.f32.mrb[10].mxu1 }
  0xf4   :  { %926 = vadd.xlane.f32.xlu1 %v859_v62  ;;  %988 = vadd.xlane.f32.xlu0 %v890_v63  ;;  %v2317_v4 = vpop.f32.mrb[11].mxu0  ;;  %v2319_v5 = vpop.f32.mrb[11].mxu1  ;;  %v892_v62 = vmul.f32 %v2409_v45, %v2409_v45 }
  0xf8   :  { %990 = vadd.xlane.f32.xlu1 %v891_v7  ;;  %665 = vadd.xlane.f32.xlu0 %v2322_v6 }
  0xf9   :  { %v2327_v8 = vpop.f32.mrb[12].mxu0  ;;  %v2329_v9 = vpop.f32.mrb[12].mxu1 }
  0xfa   :  { %v2335_v12 = vpop.f32.mrb[13].mxu0  ;;  %v2337_v13 = vpop.f32.mrb[13].mxu1 }
  0xfb   :  { %v2339_v14 = vpop.f32.mrb[14].mxu0  ;;  %v2341_v15 = vpop.f32.mrb[14].mxu1 }
  0xfc   :  { %922 = vadd.xlane.f32.xlu1 %v857_v10  ;;  %920 = vadd.xlane.f32.xlu0 %v856_v11  ;;  %v2343_v16 = vpop.f32.mrb[15].mxu0  ;;  %v2345_v17 = vpop.f32.mrb[15].mxu1 }
 0x100   :  { %986 = vadd.xlane.f32.xlu1 %v889_v18  ;;  %984 = vadd.xlane.f32.xlu0 %v888_v19  ;;  %v2445_v18 = vadd.f32 %v2301_v60, %v2265_v35  ;;  %v2449_v19 = vadd.f32 %v2313_v2, %v2265_v35  ;;  %v2465_v60 = vadd.f32 %v2315_v3, %v2265_v35 }
 0x101   :  { %v2351_v20 = vpop.f32.mrb[16].mxu0  ;;  %v2353_v21 = vpop.f32.mrb[16].mxu1  ;;  %v2471_v2 = vadd.f32 %v2265_v35, %v2309_v0  ;;  %v2485_v3 = vadd.f32 %v2265_v35, %v2319_v5 }
 0x102   :  { %v2361_v24 = vpop.f32.mrb[17].mxu0  ;;  %v2363_v25 = vpop.f32.mrb[17].mxu1  ;;  %3398 = vst [vmem:[#allocation5_spill] sm:$0xff] %v2445_v18  ;;  %3399 = vst [vmem:[#allocation6_spill] sm:$0xff] %v2449_v19  ;;  %v867_v0 = vmul.f32 %v2449_v19, %v2449_v19 }
 0x103   :  { %v2365_v26 = vpop.f32.mrb[18].mxu0  ;;  %v2367_v27 = vpop.f32.mrb[18].mxu1  ;;  %3401 = vst [vmem:[#allocation8_spill] sm:$0xff] %v2465_v60  ;;  %3402 = vst [vmem:[#allocation9_spill] sm:$0xff] %v2471_v2 }
 0x104   :  { %677 = vadd.xlane.f32.xlu1 %v2359_v23  ;;  %675 = vadd.xlane.f32.xlu0 %v2356_v22  ;;  %v2371_v28 = vpop.f32.mrb[19].mxu0  ;;  %v2373_v29 = vpop.f32.mrb[19].mxu1  ;;  %3405 = vst [vmem:[#allocation12_spill] sm:$0xff] %v2485_v3 }
 0x108   :  { %741 = vadd.xlane.f32.xlu1 %v2379_v31  ;;  %739 = vadd.xlane.f32.xlu0 %v2376_v30 }
 0x109   :  { %v2383_v32 = vpop.f32.mrb[20].mxu0  ;;  %v2385_v33 = vpop.f32.mrb[20].mxu1 }
 0x10a   :  { %v2393_v37 = vpop.f32.mrb[21].mxu0  ;;  %v2395_v40 = vpop.f32.mrb[21].mxu1 }
 0x10b   :  { %v2397_v41 = vpop.f32.mrb[22].mxu0  ;;  %v2399_v42 = vpop.f32.mrb[22].mxu1 }
 0x10c   :  { %673 = vadd.xlane.f32.xlu1 %v2391_v36  ;;  %671 = vadd.xlane.f32.xlu0 %v2388_v34  ;;  %v2403_v43 = vpop.f32.mrb[23].mxu0  ;;  %v2405_v44 = vpop.f32.mrb[23].mxu1 }
 0x110   :  { %737 = vadd.xlane.f32.xlu1 %v2413_v48  ;;  %735 = vadd.xlane.f32.xlu0 %v2409_v45 }
 0x111   :  { %v2429_v57 = vpop.f32.mrb[24].mxu0  ;;  %v2441_v11 = vpop.f32.mrb[24].mxu1 }
 0x112   :  { %v2435_v63 = vpop.f32.mrb[25].mxu0 }
 0x113   :  { %v2437_v7 = vpop.f32.mrb[26].mxu0 }
 0x114   :  { %934 = vadd.xlane.f32.xlu1 %v863_v49  ;;  %932 = vadd.xlane.f32.xlu0 %v862_v52  ;;  %v2439_v10 = vpop.f32.mrb[27].mxu0  ;;  %v2451_v49 = vpop.f32.mrb[25].mxu1 }
 0x115   :  { %v2453_v52 = vpop.f32.mrb[26].mxu1 }
 0x118   :  { %998 = vadd.xlane.f32.xlu1 %v895_v53  ;;  %996 = vadd.xlane.f32.xlu0 %v894_v54  ;;  %v2457_v53 = vpop.f32.mrb[27].mxu1  ;;  %v2461_v54 = vadd.f32 %v2303_v61, %v2265_v35  ;;  %v2481_v61 = vadd.f32 %v2265_v35, %v2311_v1  ;;  %v899_v1 = vmul.f32 %v2465_v60, %v2465_v60 }
 0x11a   :  { %3400 = vst [vmem:[#allocation7_spill] sm:$0xff] %v2461_v54  ;;  %3404 = vst [vmem:[#allocation11_spill] sm:$0xff] %v2481_v61 }
 0x11c   :  { %930 = vadd.xlane.f32.xlu1 %v861_v55  ;;  %928 = vadd.xlane.f32.xlu0 %v860_v56  ;;  %v2475_v55 = vadd.f32 %v2265_v35, %v2317_v4  ;;  %v866_v4 = vmul.f32 %v2445_v18, %v2445_v18  ;;  %v898_v56 = vmul.f32 %v2461_v54, %v2461_v54 }
 0x11e   :  { %3403 = vst [vmem:[#allocation10_spill] sm:$0xff] %v2475_v55  ;;  %v865_v5 = vmul.f32 %v2475_v55, %v2475_v55 }
 0x120   :  { %994 = vadd.xlane.f32.xlu1 %v893_v59  ;;  %992 = vadd.xlane.f32.xlu0 %v892_v62  ;;  %v864_v59 = vmul.f32 %v2471_v2, %v2471_v2  ;;  %v2501_v62 = vpop.f32.mrb[28].mxu0 }
 0x124   :  { %685 = vadd.xlane.f32.xlu1 %v2449_v19  ;;  %683 = vadd.xlane.f32.xlu0 %v2445_v18 }
 0x128   :  { %749 = vadd.xlane.f32.xlu1 %v2465_v60  ;;  %747 = vadd.xlane.f32.xlu0 %v2461_v54  ;;  %v2507_v60 = vpop.f32.mrb[29].mxu0 }
 0x12c   :  { %681 = vadd.xlane.f32.xlu1 %v2475_v55  ;;  %679 = vadd.xlane.f32.xlu0 %v2471_v2  ;;  %v2513_v55 = vpop.f32.mrb[28].mxu1  ;;  %v2547_v2 = vadd.f32 %v2265_v35, %v2343_v16 }
 0x12e   :  { %3412 = vst [vmem:[#allocation19_spill] sm:$0xff] %v2547_v2 }
 0x130   :  { %745 = vadd.xlane.f32.xlu1 %v2485_v3  ;;  %743 = vadd.xlane.f32.xlu0 %v2481_v61 }
 0x134   :  { %942 = vadd.xlane.f32.xlu1 %v867_v0  ;;  %940 = vadd.xlane.f32.xlu0 %v866_v4  ;;  %v897_v0 = vmul.f32 %v2485_v3, %v2485_v3  ;;  %v896_v4 = vmul.f32 %v2481_v61, %v2481_v61  ;;  %v2523_v3 = vpop.f32.mrb[29].mxu1 }
 0x135   :  { %3408 = vst [vmem:[#allocation15_spill] sm:$0xff] %v2523_v3  ;;  %v2525_v61 = vpop.f32.mrb[30].mxu1 }
 0x138   :  { %1006 = vadd.xlane.f32.xlu1 %v899_v1  ;;  %1004 = vadd.xlane.f32.xlu0 %v898_v56  ;;  %v2509_v1 = vpop.f32.mrb[30].mxu0 }
 0x139   :  { %v2511_v56 = vpop.f32.mrb[31].mxu0 }
 0x13c   :  { %938 = vadd.xlane.f32.xlu1 %v865_v5  ;;  %936 = vadd.xlane.f32.xlu0 %v864_v59  ;;  %v2517_v5 = vadd.f32 %v2327_v8, %v2265_v35  ;;  %v2521_v59 = vadd.f32 %v2339_v14, %v2265_v35  ;;  %v2537_v8 = vadd.f32 %v2341_v15, %v2265_v35 }
 0x13d   :  { %v2543_v14 = vadd.f32 %v2265_v35, %v2335_v12  ;;  %v2557_v15 = vadd.f32 %v2265_v35, %v2345_v17  ;;  %v869_v17 = vmul.f32 %v2547_v2, %v2547_v2 }
 0x13e   :  { %3406 = vst [vmem:[#allocation13_spill] sm:$0xff] %v2517_v5  ;;  %3407 = vst [vmem:[#allocation14_spill] sm:$0xff] %v2521_v59  ;;  %v871_v12 = vmul.f32 %v2521_v59, %v2521_v59  ;;  %v870_v16 = vmul.f32 %v2517_v5, %v2517_v5 }
 0x13f   :  { %3410 = vst [vmem:[#allocation17_spill] sm:$0xff] %v2537_v8  ;;  %3411 = vst [vmem:[#allocation18_spill] sm:$0xff] %v2543_v14  ;;  %v868_v18 = vmul.f32 %v2543_v14, %v2543_v14 }
 0x140   :  { %1002 = vadd.xlane.f32.xlu1 %v897_v0  ;;  %1000 = vadd.xlane.f32.xlu0 %v896_v4  ;;  %v2529_v0 = vpop.f32.mrb[31].mxu1  ;;  %v2533_v4 = vadd.f32 %v2329_v9, %v2265_v35  ;;  %v2553_v9 = vadd.f32 %v2265_v35, %v2337_v13  ;;  %3414 = vst [vmem:[#allocation21_spill] sm:$0xff] %v2557_v15 }
 0x141   :  { %v903_v13 = vmul.f32 %v2537_v8, %v2537_v8 }
 0x142   :  { %3409 = vst [vmem:[#allocation16_spill] sm:$0xff] %v2533_v4  ;;  %3413 = vst [vmem:[#allocation20_spill] sm:$0xff] %v2553_v9  ;;  %v902_v54 = vmul.f32 %v2533_v4, %v2533_v4 }
 0x144   :  { %693 = vadd.xlane.f32.xlu1 %v2521_v59  ;;  %691 = vadd.xlane.f32.xlu0 %v2517_v5  ;;  %v2713_v59 = vld [vmem:[%s3372_s4] ss:$0 sm:$0xff] }
 0x148   :  { %757 = vadd.xlane.f32.xlu1 %v2537_v8  ;;  %755 = vadd.xlane.f32.xlu0 %v2533_v4 }
 0x14c   :  { %689 = vadd.xlane.f32.xlu1 %v2547_v2  ;;  %687 = vadd.xlane.f32.xlu0 %v2543_v14 }
 0x150   :  { %753 = vadd.xlane.f32.xlu1 %v2557_v15  ;;  %751 = vadd.xlane.f32.xlu0 %v2553_v9 }
 0x154   :  { %950 = vadd.xlane.f32.xlu1 %v871_v12  ;;  %948 = vadd.xlane.f32.xlu0 %v870_v16  ;;  %v901_v12 = vmul.f32 %v2557_v15, %v2557_v15  ;;  %v900_v16 = vmul.f32 %v2553_v9, %v2553_v9 }
 0x158   :  { %1014 = vadd.xlane.f32.xlu1 %v903_v13  ;;  %1012 = vadd.xlane.f32.xlu0 %v902_v54  ;;  %v2579_v13 = vadd.f32 %v2351_v20, %v2265_v35  ;;  %v2583_v54 = vadd.f32 %v2365_v26, %v2265_v35  ;;  %v2599_v20 = vadd.f32 %v2265_v35, %v2361_v24 }
 0x159   :  { %v2603_v26 = vadd.f32 %v2265_v35, %v2371_v28 }
 0x15a   :  { %3415 = vst [vmem:[#allocation22_spill] sm:$0xff] %v2579_v13  ;;  %3416 = vst [vmem:[#allocation23_spill] sm:$0xff] %v2583_v54  ;;  %v875_v28 = vmul.f32 %v2583_v54, %v2583_v54 }
 0x15b   :  { %3419 = vst [vmem:[#allocation26_spill] sm:$0xff] %v2599_v20  ;;  %3420 = vst [vmem:[#allocation27_spill] sm:$0xff] %v2603_v26 }
 0x15c   :  { %946 = vadd.xlane.f32.xlu1 %v869_v17  ;;  %944 = vadd.xlane.f32.xlu0 %v868_v18  ;;  %v2589_v18 = vadd.f32 %v2353_v21, %v2265_v35  ;;  %v2593_v17 = vadd.f32 %v2367_v27, %v2265_v35  ;;  %v2609_v21 = vadd.f32 %v2265_v35, %v2363_v25 }
 0x15d   :  { %v2613_v27 = vadd.f32 %v2265_v35, %v2373_v29 }
 0x15e   :  { %3417 = vst [vmem:[#allocation24_spill] sm:$0xff] %v2589_v18  ;;  %3418 = vst [vmem:[#allocation25_spill] sm:$0xff] %v2593_v17  ;;  %v907_v29 = vmul.f32 %v2593_v17, %v2593_v17  ;;  %v906_v15 = vmul.f32 %v2589_v18, %v2589_v18 }
 0x15f   :  { %3421 = vst [vmem:[#allocation28_spill] sm:$0xff] %v2609_v21  ;;  %3422 = vst [vmem:[#allocation29_spill] sm:$0xff] %v2613_v27 }
 0x160   :  { %1010 = vadd.xlane.f32.xlu1 %v901_v12  ;;  %1008 = vadd.xlane.f32.xlu0 %v900_v16  ;;  %v874_v16 = vmul.f32 %v2579_v13, %v2579_v13 }
 0x164   :  { %701 = vadd.xlane.f32.xlu1 %v2583_v54  ;;  %699 = vadd.xlane.f32.xlu0 %v2579_v13  ;;  %v873_v54 = vmul.f32 %v2603_v26, %v2603_v26 }
 0x168   :  { %765 = vadd.xlane.f32.xlu1 %v2593_v17  ;;  %763 = vadd.xlane.f32.xlu0 %v2589_v18 }
 0x16c   :  { %697 = vadd.xlane.f32.xlu1 %v2603_v26  ;;  %695 = vadd.xlane.f32.xlu0 %v2599_v20  ;;  %v904_v26 = vmul.f32 %v2609_v21, %v2609_v21 }
 0x170   :  { %761 = vadd.xlane.f32.xlu1 %v2613_v27  ;;  %759 = vadd.xlane.f32.xlu0 %v2609_v21 }
 0x171   :  { %v732_v24 = vpop.xlane.xlu0 %731  ;;  %v668_v12 = vpop.xlane.xlu1 %667 }
 0x172   :  { %v2625_v4 = vmul.f32 0.010416667, %v668_v12  ;;  %v905_v12 = vmul.f32 %v2613_v27, %v2613_v27 }
 0x174   :  { %958 = vadd.xlane.f32.xlu1 %v875_v28  ;;  %956 = vadd.xlane.f32.xlu0 %v874_v16  ;;  %v872_v28 = vmul.f32 %v2599_v20, %v2599_v20  ;;  %v2631_v16 = vmul.f32 0.010416667, %v732_v24 }
 0x175   :  { %v670_v25 = vpop.xlane.xlu1 %669  ;;  %v664_v9 = vpop.xlane.xlu0 %663 }
 0x178   :  { %1022 = vadd.xlane.f32.xlu1 %v907_v29  ;;  %1020 = vadd.xlane.f32.xlu0 %v906_v15  ;;  %v1114_v29 = vmul.f32 %v2625_v4, %v2625_v4  ;;  %v2635_v15 = vmul.f32 0.010416667, %v670_v25 }
 0x179   :  { %v734_v14 = vpop.xlane.xlu1 %733  ;;  %v728_v2 = vpop.xlane.xlu0 %727 }
 0x17a   :  { %v2643_v24 = vmul.f32 0.010416667, %v734_v14  ;;  %v1115_v27 = vmul.f32 %v2635_v15, %v2635_v15 }
 0x17c   :  { %954 = vadd.xlane.f32.xlu1 %v873_v54  ;;  %952 = vadd.xlane.f32.xlu0 %v872_v28  ;;  %v1146_v54 = vmul.f32 %v2631_v16, %v2631_v16  ;;  %v2647_v28 = vadd.f32 %v2397_v41, %v2265_v35  ;;  %v2656_v41 = vmul.f32 0.010416667, %v664_v9 }
 0x17d   :  { %v730_v17 = vpop.xlane.xlu1 %729  ;;  %v925_v13 = vpop.xlane.xlu0 %924 }
 0x17e   :  { %v1050_v18 = vmul.f32 0.010416667, %v925_v13 }
 0x180   :  { %v1178_v8 = vsub.f32 %v1050_v18, %v1114_v29  ;;  %1018 = vadd.xlane.f32.xlu1 %v905_v12  ;;  %1016 = vadd.xlane.f32.xlu0 %v904_v26  ;;  %v2653_v18 = vadd.f32 %v2383_v32, %v2265_v35  ;;  %v2660_v26 = vadd.f32 %v2399_v42, %v2265_v35 }
 0x181   :  { %v927_v25 = vpop.xlane.xlu1 %926  ;;  %v989_v13 = vpop.xlane.xlu0 %988  ;;  %v1112_v42 = vmul.f32 %v2656_v41, %v2656_v41 }
 0x182   :  { %v1242_v20 = vadd.f32 1e-05, %v1178_v8  ;;  %v1051_v5 = vmul.f32 0.010416667, %v927_v25  ;;  %v1082_v21 = vmul.f32 0.010416667, %v989_v13  ;;  %v1147_v25 = vmul.f32 %v2643_v24, %v2643_v24 }
 0x184   :  { %1937 = vrsqrt.f32 %v1242_v20  ;;  %v1179_v14 = vsub.f32 %v1051_v5, %v1115_v27  ;;  %v1210_v29 = vsub.f32 %v1082_v21, %v1146_v54  ;;  %709 = vadd.xlane.f32.xlu1 %v2647_v28  ;;  %707 = vadd.xlane.f32.xlu0 %v2653_v18  ;;  %v2667_v5 = vadd.f32 %v2385_v33, %v2265_v35 }
 0x185   :  { %v991_v8 = vpop.xlane.xlu1 %990  ;;  %v666_v12 = vpop.xlane.xlu0 %665  ;;  %v2674_v27 = vmul.f32 0.010416667, %v730_v17  ;;  %v2678_v54 = vadd.f32 %v2265_v35, %v2403_v43  ;;  %v2687_v17 = vadd.f32 %v2265_v35, %v2393_v37 }
 0x186   :  { %v1243_v32 = vadd.f32 1e-05, %v1179_v14  ;;  %v1274_v13 = vadd.f32 1e-05, %v1210_v29  ;;  %v1083_v20 = vmul.f32 0.010416667, %v991_v8 }
 0x187   :  { %v2669_v9 = vmul.f32 0.010416667, %v666_v12 }
 0x188   :  { %1939 = vrsqrt.f32 %v1243_v32  ;;  %v1211_v21 = vsub.f32 %v1083_v20, %v1147_v25  ;;  %773 = vadd.xlane.f32.xlu1 %v2660_v26  ;;  %771 = vadd.xlane.f32.xlu0 %v2667_v5  ;;  %v2683_v32 = vmul.f32 0.010416667, %v728_v2  ;;  %v2699_v2 = vadd.f32 %v2265_v35, %v2405_v44 }
 0x189   :  { %1941 = vrsqrt.f32 %v1274_v13  ;;  %v923_v33 = vpop.xlane.xlu1 %922  ;;  %v921_v14 = vpop.xlane.xlu0 %920  ;;  %v1113_v8 = vmul.f32 %v2669_v9, %v2669_v9  ;;  %v1370_v13 = vsub.f32 %v2268_v38, %v2625_v4 }
 0x18a   :  { %v1275_v29 = vadd.f32 1e-05, %v1211_v21  ;;  %v1049_v12 = vmul.f32 0.010416667, %v923_v33  ;;  %v1048_v25 = vmul.f32 0.010416667, %v921_v14  ;;  %v1144_v4 = vmul.f32 %v2683_v32, %v2683_v32 }
 0x18b   :  { %v2695_v21 = vld [vmem:[%s3371_s3] ss:$0 sm:$0xff] }
 0x18c   :  { %1943 = vrsqrt.f32 %v1275_v29  ;;  %v1177_v43 = vsub.f32 %v1049_v12, %v1113_v8  ;;  %v1176_v20 = vsub.f32 %v1048_v25, %v1112_v42  ;;  %705 = vadd.xlane.f32.xlu1 %v2678_v54  ;;  %703 = vadd.xlane.f32.xlu0 %v2687_v17  ;;  %v1145_v42 = vmul.f32 %v2674_v27, %v2674_v27 }
 0x18d   :  { %v987_v37 = vpop.xlane.xlu1 %986  ;;  %v985_v33 = vpop.xlane.xlu0 %984  ;;  %v2708_v25 = vadd.f32 %v2265_v35, %v2395_v40 }
 0x18e   :  { %v1938_v14 = vpop.eup %1937  ;;  %v1241_v29 = vadd.f32 1e-05, %v1177_v43  ;;  %v1240_v8 = vadd.f32 1e-05, %v1176_v20  ;;  %v1081_v38 = vmul.f32 0.010416667, %v987_v37  ;;  %v1371_v43 = vsub.f32 %v2279_v47, %v2635_v15 }
 0x18f   :  { %v1434_v12 = vmul.f32 %v1938_v14, %v1370_v13  ;;  %v1080_v44 = vmul.f32 0.010416667, %v985_v33  ;;  %v1402_v14 = vsub.f32 %v2271_v39, %v2631_v16 }
 0x190   :  { %1945 = vrsqrt.f32 %v1241_v29  ;;  %v1209_v19 = vsub.f32 %v1081_v38, %v1145_v42  ;;  %769 = vadd.xlane.f32.xlu1 %v2699_v2  ;;  %767 = vadd.xlane.f32.xlu0 %v2708_v25  ;;  %v879_v42 = vmul.f32 %v2647_v28, %v2647_v28 }
 0x191   :  { %v1505_v20 = vmul.f32 %v2695_v21, %v1434_v12  ;;  %1947 = vrsqrt.f32 %v1240_v8  ;;  %v1208_v13 = vsub.f32 %v1080_v44, %v1144_v4  ;;  %v678_v40 = vpop.xlane.xlu1 %677  ;;  %v676_v37 = vpop.xlane.xlu0 %675  ;;  %v878_v8 = vmul.f32 %v2653_v18, %v2653_v18 }
 0x192   :  { %v1940_v33 = vpop.eup %1939  ;;  %v1273_v3 = vadd.f32 1e-05, %v1209_v19  ;;  %v1403_v12 = vsub.f32 %v2287_v51, %v2643_v24 }
 0x193   :  { %v1942_v29 = vpop.eup %1941  ;;  %v1576_v38 = vadd.f32 %v2713_v59, %v1505_v20  ;;  %v1435_v47 = vmul.f32 %v1940_v33, %v1371_v43  ;;  %v1272_v15 = vadd.f32 1e-05, %v1208_v13  ;;  %v911_v20 = vmul.f32 %v2660_v26, %v2660_v26 }
 0x194   :  { %v1466_v4 = vmul.f32 %v1942_v29, %v1402_v14  ;;  %1949 = vrsqrt.f32 %v1273_v3  ;;  %966 = vadd.xlane.f32.xlu1 %v879_v42  ;;  %964 = vadd.xlane.f32.xlu0 %v878_v8  ;;  %v910_v33 = vmul.f32 %v2667_v5, %v2667_v5  ;;  %v1369_v14 = vsub.f32 %v2322_v6, %v2669_v9 }
 0x195   :  { %1640 = vst [vmem:[#allocation2 + $0x10] sm:$0xff] %v1576_v38  ;;  %v1506_v39 = vmul.f32 %v2695_v21, %v1435_v47  ;;  %1951 = vrsqrt.f32 %v1272_v15  ;;  %v742_v19 = vpop.xlane.xlu1 %741  ;;  %v740_v16 = vpop.xlane.xlu0 %739  ;;  %v1368_v47 = vsub.f32 %v2276_v46, %v2656_v41  ;;  %v877_v15 = vmul.f32 %v2678_v54, %v2678_v54 }
 0x196   :  { %v1944_v44 = vpop.eup %1943  ;;  %v1537_v43 = vmul.f32 %v2695_v21, %v1466_v4  ;;  %v1401_v6 = vsub.f32 %v2296_v58, %v2674_v27  ;;  %v2750_v46 = vmul.f32 0.010416667, %v678_v40  ;;  %v2752_v41 = vmul.f32 0.010416667, %v676_v37 }
 0x197   :  { %v1577_v13 = vadd.f32 %v2713_v59, %v1506_v39  ;;  %v1467_v3 = vmul.f32 %v1944_v44, %v1403_v12  ;;  %v876_v39 = vmul.f32 %v2687_v17, %v2687_v17  ;;  %v909_v58 = vmul.f32 %v2699_v2, %v2699_v2 }
 0x198   :  { %v1608_v51 = vadd.f32 %v2713_v59, %v1537_v43  ;;  %1030 = vadd.xlane.f32.xlu1 %v911_v20  ;;  %1028 = vadd.xlane.f32.xlu0 %v910_v33  ;;  %v908_v37 = vmul.f32 %v2708_v25, %v2708_v25 }
 0x199   :  { %1641 = vst [vmem:[#allocation2 + $0x18] sm:$0xff] %v1577_v13  ;;  %v1538_v24 = vmul.f32 %v2695_v21, %v1467_v3  ;;  %v674_v42 = vpop.xlane.xlu1 %673  ;;  %v672_v29 = vpop.xlane.xlu0 %671  ;;  %v1400_v3 = vsub.f32 %v2284_v50, %v2683_v32  ;;  %v1119_v50 = vmul.f32 %v2750_v46, %v2750_v46  ;;  %v1118_v32 = vmul.f32 %v2752_v41, %v2752_v41 }
 0x19a   :  { %v1946_v38 = vpop.eup %1945  ;;  %1672 = vst [vmem:[#allocation2 + $0x110] sm:$0xff] %v1608_v51 }
 0x19b   :  { %v1948_v8 = vpop.eup %1947  ;;  %v1609_v4 = vadd.f32 %v2713_v59, %v1538_v24  ;;  %v1433_v12 = vmul.f32 %v1946_v38, %v1369_v14 }
 0x19c   :  { %v1432_v44 = vmul.f32 %v1948_v8, %v1368_v47  ;;  %962 = vadd.xlane.f32.xlu1 %v877_v15  ;;  %960 = vadd.xlane.f32.xlu0 %v876_v39  ;;  %v2772_v47 = vadd.f32 %v2437_v7, %v2265_v35 }
 0x19d   :  { %1673 = vst [vmem:[#allocation2 + $0x118] sm:$0xff] %v1609_v4  ;;  %v1504_v9 = vmul.f32 %v2695_v21, %v1433_v12  ;;  %v738_v43 = vpop.xlane.xlu1 %737  ;;  %v2754_v20 = vpop.xlane.xlu0 %735  ;;  %v2775_v12 = vmul.f32 0.010416667, %v742_v19  ;;  %v2788_v19 = vmul.f32 0.010416667, %v672_v29  ;;  %v2801_v29 = vadd.f32 %v2441_v11, %v2265_v35 }
 0x19e   :  { %v1950_v13 = vpop.eup %1949  ;;  %v1503_v33 = vmul.f32 %v2695_v21, %v1432_v44 }
 0x19f   :  { %v1952_v27 = vpop.eup %1951  ;;  %v1575_v51 = vadd.f32 %v2713_v59, %v1504_v9  ;;  %v1465_v40 = vmul.f32 %v1950_v13, %v1401_v6  ;;  %v2778_v9 = vmul.f32 0.010416667, %v740_v16  ;;  %v2782_v13 = vadd.f32 %v2429_v57, %v2265_v35 }
 0x1a0   :  { %v1574_v24 = vadd.f32 %v2713_v59, %v1503_v33  ;;  %v1464_v14 = vmul.f32 %v1952_v27, %v1400_v3  ;;  %1026 = vadd.xlane.f32.xlu1 %v909_v58  ;;  %1024 = vadd.xlane.f32.xlu0 %v908_v37  ;;  %v2786_v58 = vmul.f32 0.010416667, %v674_v42  ;;  %v2792_v27 = vadd.f32 %v2453_v52, %v2265_v35 }
 0x1a1   :  { %1639 = vst [vmem:[#allocation2 + $0x8] sm:$0xff] %v1575_v51  ;;  %v1536_v38 = vmul.f32 %v2695_v21, %v1465_v40  ;;  %v935_v15 = vpop.xlane.xlu1 %934  ;;  %v933_v8 = vpop.xlane.xlu0 %932  ;;  %v1151_v51 = vmul.f32 %v2775_v12, %v2775_v12  ;;  %v1150_v42 = vmul.f32 %v2778_v9, %v2778_v9 }
 0x1a2   :  { %1638 = vst [vmem:[#allocation2] sm:$0xff] %v1574_v24  ;;  %v1535_v4 = vmul.f32 %v2695_v21, %v1464_v14  ;;  %v1055_v39 = vmul.f32 0.010416667, %v935_v15  ;;  %v1054_v44 = vmul.f32 0.010416667, %v933_v8  ;;  %v2805_v14 = vadd.f32 %v2265_v35, %v2439_v10 }
 0x1a3   :  { %v1607_v6 = vadd.f32 %v2713_v59, %v1536_v38 }
 0x1a4   :  { %v1606_v7 = vadd.f32 %v2713_v59, %v1535_v4  ;;  %v1183_v3 = vsub.f32 %v1055_v39, %v1119_v50  ;;  %v1182_v33 = vsub.f32 %v1054_v44, %v1118_v32  ;;  %717 = vadd.xlane.f32.xlu1 %v2772_v47  ;;  %715 = vadd.xlane.f32.xlu0 %v2782_v13  ;;  %v2810_v32 = vmul.f32 0.010416667, %v738_v43 }
 0x1a5   :  { %1671 = vst [vmem:[#allocation2 + $0x108] sm:$0xff] %v1607_v6  ;;  %v999_v16 = vpop.xlane.xlu1 %998  ;;  %v997_v57 = vpop.xlane.xlu0 %996  ;;  %v1117_v50 = vmul.f32 %v2786_v58, %v2786_v58  ;;  %v1116_v4 = vmul.f32 %v2788_v19, %v2788_v19  ;;  %v2817_v6 = vadd.f32 %v2265_v35, %v2435_v63 }
 0x1a6   :  { %1670 = vst [vmem:[#allocation2 + $0x100] sm:$0xff] %v1606_v7  ;;  %v1247_v40 = vadd.f32 1e-05, %v1183_v3  ;;  %v1246_v37 = vadd.f32 1e-05, %v1182_v33  ;;  %v1149_v63 = vmul.f32 %v2810_v32, %v2810_v32 }
 0x1a7   :  { %v1087_v24 = vmul.f32 0.010416667, %v999_v16  ;;  %v1086_v52 = vmul.f32 0.010416667, %v997_v57  ;;  %v2820_v7 = vmul.f32 0.010416667, %v2754_v20  ;;  %v2825_v16 = vadd.f32 %v2265_v35, %v2457_v53 }
 0x1a8   :  { %1953 = vrsqrt.f32 %v1247_v40  ;;  %781 = vadd.xlane.f32.xlu1 %v2792_v27  ;;  %779 = vadd.xlane.f32.xlu0 %v2801_v29 }
 0x1a9   :  { %v1215_v38 = vsub.f32 %v1087_v24, %v1151_v51  ;;  %1955 = vrsqrt.f32 %v1246_v37  ;;  %v1214_v15 = vsub.f32 %v1086_v52, %v1150_v42  ;;  %v931_v11 = vpop.xlane.xlu1 %930  ;;  %v929_v8 = vpop.xlane.xlu0 %928  ;;  %v1148_v24 = vmul.f32 %v2820_v7, %v2820_v7 }
 0x1aa   :  { %v1053_v39 = vmul.f32 0.010416667, %v931_v11  ;;  %v1052_v44 = vmul.f32 0.010416667, %v929_v8  ;;  %v2834_v42 = vadd.f32 %v2265_v35, %v2451_v49  ;;  %v883_v49 = vmul.f32 %v2772_v47, %v2772_v47 }
 0x1ab   :  { %v1279_v10 = vadd.f32 1e-05, %v1215_v38  ;;  %v1278_v43 = vadd.f32 1e-05, %v1214_v15  ;;  %v1375_v38 = vsub.f32 %v2359_v23, %v2750_v46  ;;  %v882_v23 = vmul.f32 %v2782_v13, %v2782_v13 }
 0x1ac   :  { %v1181_v3 = vsub.f32 %v1053_v39, %v1117_v50  ;;  %v1180_v33 = vsub.f32 %v1052_v44, %v1116_v4  ;;  %713 = vadd.xlane.f32.xlu1 %v2805_v14  ;;  %711 = vadd.xlane.f32.xlu0 %v2817_v6  ;;  %v1374_v4 = vsub.f32 %v2356_v22, %v2752_v41 }
 0x1ad   :  { %1957 = vrsqrt.f32 %v1279_v10  ;;  %v995_v57 = vpop.xlane.xlu1 %994  ;;  %v993_v51 = vpop.xlane.xlu0 %992 }
 0x1ae   :  { %1959 = vrsqrt.f32 %v1278_v43  ;;  %v1245_v20 = vadd.f32 1e-05, %v1181_v3  ;;  %v1244_v40 = vadd.f32 1e-05, %v1180_v33  ;;  %v1085_v37 = vmul.f32 0.010416667, %v995_v57 }
 0x1af   :  { %v1084_v53 = vmul.f32 0.010416667, %v993_v51  ;;  %v1407_v43 = vsub.f32 %v2379_v31, %v2775_v12  ;;  %v1406_v57 = vsub.f32 %v2376_v30, %v2778_v9  ;;  %v914_v12 = vmul.f32 %v2801_v29, %v2801_v29 }
 0x1b0   :  { %1961 = vrsqrt.f32 %v1245_v20  ;;  %v1213_v52 = vsub.f32 %v1085_v37, %v1149_v63  ;;  %777 = vadd.xlane.f32.xlu1 %v2825_v16  ;;  %775 = vadd.xlane.f32.xlu0 %v2834_v42  ;;  %v915_v63 = vmul.f32 %v2792_v27, %v2792_v27 }
 0x1b1   :  { %1963 = vrsqrt.f32 %v1244_v40  ;;  %v1212_v50 = vsub.f32 %v1084_v53, %v1148_v24  ;;  %v686_v15 = vpop.xlane.xlu1 %685  ;;  %v684_v11 = vpop.xlane.xlu0 %683  ;;  %v1373_v53 = vsub.f32 %v2391_v36, %v2786_v58  ;;  %v880_v58 = vmul.f32 %v2817_v6, %v2817_v6 }
 0x1b2   :  { %v1954_v8 = vpop.eup %1953  ;;  %v1277_v35 = vadd.f32 1e-05, %v1213_v52 }
 0x1b3   :  { %v1956_v10 = vpop.eup %1955  ;;  %v1439_v39 = vmul.f32 %v1954_v8, %v1375_v38  ;;  %v1276_v44 = vadd.f32 1e-05, %v1212_v50  ;;  %v1372_v50 = vsub.f32 %v2388_v34, %v2788_v19  ;;  %v1405_v34 = vsub.f32 %v2413_v48, %v2810_v32 }
 0x1b4   :  { %v1438_v46 = vmul.f32 %v1956_v10, %v1374_v4  ;;  %1965 = vrsqrt.f32 %v1277_v35  ;;  %974 = vadd.xlane.f32.xlu1 %v883_v49  ;;  %972 = vadd.xlane.f32.xlu0 %v882_v23  ;;  %v881_v4 = vmul.f32 %v2805_v14, %v2805_v14  ;;  %v2877_v23 = vmul.f32 0.010416667, %v684_v11 }
 0x1b5   :  { %v1510_v3 = vmul.f32 %v2695_v21, %v1439_v39  ;;  %1967 = vrsqrt.f32 %v1276_v44  ;;  %v750_v22 = vpop.xlane.xlu1 %749  ;;  %v2849_v41 = vpop.xlane.xlu0 %747  ;;  %v2875_v44 = vmul.f32 0.010416667, %v686_v15  ;;  %v913_v48 = vmul.f32 %v2825_v16, %v2825_v16 }
 0x1b6   :  { %v1509_v51 = vmul.f32 %v2695_v21, %v1438_v46  ;;  %v912_v11 = vmul.f32 %v2834_v42, %v2834_v42 }
 0x1b7   :  { %v1958_v33 = vpop.eup %1957  ;;  %v1581_v40 = vadd.f32 %v2713_v59, %v1510_v3 }
 0x1b8   :  { %v1960_v20 = vpop.eup %1959  ;;  %v1471_v31 = vmul.f32 %v1958_v33, %v1407_v43  ;;  %v1580_v37 = vadd.f32 %v2713_v59, %v1509_v51  ;;  %1038 = vadd.xlane.f32.xlu1 %v915_v63  ;;  %1036 = vadd.xlane.f32.xlu0 %v914_v12  ;;  %v1404_v33 = vsub.f32 %v2409_v45, %v2820_v7 }
 0x1b9   :  { %v1470_v24 = vmul.f32 %v1960_v20, %v1406_v57  ;;  %1645 = vst [vmem:[#allocation2 + $0x38] sm:$0xff] %v1581_v40  ;;  %v682_v9 = vpop.xlane.xlu1 %681  ;;  %v680_v52 = vpop.xlane.xlu0 %679  ;;  %v1123_v7 = vmul.f32 %v2875_v44, %v2875_v44  ;;  %v1122_v40 = vmul.f32 %v2877_v23, %v2877_v23 }
 0x1ba   :  { %v1542_v30 = vmul.f32 %v2695_v21, %v1471_v31  ;;  %v1962_v38 = vpop.eup %1961  ;;  %1644 = vst [vmem:[#allocation2 + $0x30] sm:$0xff] %v1580_v37  ;;  %v2898_v31 = vld [vmem:[%s3370_s2] ss:$0 sm:$0xff] }
 0x1bb   :  { %v1541_v8 = vmul.f32 %v2695_v21, %v1470_v24  ;;  %v1964_v35 = vpop.eup %1963  ;;  %v1437_v36 = vmul.f32 %v1962_v38, %v1373_v53  ;;  %v2902_v12 = vadd.f32 %v2898_v31, %v2509_v1 }
 0x1bc   :  { %v1613_v49 = vadd.f32 %v2713_v59, %v1542_v30  ;;  %v1436_v39 = vmul.f32 %v1964_v35, %v1372_v50  ;;  %970 = vadd.xlane.f32.xlu1 %v881_v4  ;;  %968 = vadd.xlane.f32.xlu0 %v880_v58  ;;  %v2905_v30 = vmul.f32 0.010416667, %v750_v22  ;;  %v2909_v4 = vmul.f32 0.010416667, %v2849_v41 }
 0x1bd   :  { %v1612_v10 = vadd.f32 %v2713_v59, %v1541_v8  ;;  %v1508_v19 = vmul.f32 %v2695_v21, %v1437_v36  ;;  %v746_v46 = vpop.xlane.xlu1 %745  ;;  %v2879_v43 = vpop.xlane.xlu0 %743  ;;  %v2913_v35 = vadd.f32 %v2898_v31, %v2501_v62  ;;  %v2917_v22 = vmul.f32 0.010416667, %v682_v9 }
 0x1be   :  { %1677 = vst [vmem:[#allocation2 + $0x138] sm:$0xff] %v1613_v49  ;;  %v1966_v3 = vpop.eup %1965  ;;  %v1507_v57 = vmul.f32 %v2695_v21, %v1436_v39  ;;  %v2919_v58 = vmul.f32 0.010416667, %v680_v52  ;;  %v1155_v39 = vmul.f32 %v2905_v30, %v2905_v30  ;;  %v1154_v9 = vmul.f32 %v2909_v4, %v2909_v4 }
 0x1bf   :  { %1676 = vst [vmem:[#allocation2 + $0x130] sm:$0xff] %v1612_v10  ;;  %v1968_v32 = vpop.eup %1967  ;;  %v1579_v15 = vadd.f32 %v2713_v59, %v1508_v19  ;;  %v1469_v51 = vmul.f32 %v1966_v3, %v1405_v34  ;;  %v2923_v10 = vadd.f32 %v2898_v31, %v2525_v61  ;;  %v2932_v52 = vadd.f32 %v2898_v31, %v2513_v55 }
 0x1c0   :  { %v1578_v63 = vadd.f32 %v2713_v59, %v1507_v57  ;;  %v1468_v20 = vmul.f32 %v1968_v32, %v1404_v33  ;;  %1034 = vadd.xlane.f32.xlu1 %v913_v48  ;;  %1032 = vadd.xlane.f32.xlu0 %v912_v11  ;;  %v2936_v33 = vadd.f32 %v2898_v31, %v2511_v56  ;;  %v2941_v32 = vmul.f32 0.010416667, %v746_v46 }
 0x1c1   :  { %1643 = vst [vmem:[#allocation2 + $0x28] sm:$0xff] %v1579_v15  ;;  %v1540_v45 = vmul.f32 %v2695_v21, %v1469_v51  ;;  %v943_v37 = vpop.xlane.xlu1 %942  ;;  %v941_v24 = vpop.xlane.xlu0 %940  ;;  %v1121_v48 = vmul.f32 %v2917_v22, %v2917_v22  ;;  %v1120_v11 = vmul.f32 %v2919_v58, %v2919_v58 }
 0x1c2   :  { %1642 = vst [vmem:[#allocation2 + $0x20] sm:$0xff] %v1578_v63  ;;  %v1539_v53 = vmul.f32 %v2695_v21, %v1468_v20  ;;  %v1059_v38 = vmul.f32 0.010416667, %v943_v37  ;;  %v1058_v50 = vmul.f32 0.010416667, %v941_v24  ;;  %v2956_v24 = vadd.f32 %v2898_v31, %v2529_v0 }
 0x1c3   :  { %v1611_v8 = vadd.f32 %v2713_v59, %v1540_v45  ;;  %v2948_v45 = vadd.f32 %v2898_v31, %v2507_v60  ;;  %v1153_v60 = vmul.f32 %v2941_v32, %v2941_v32 }
 0x1c4   :  { %v1610_v1 = vadd.f32 %v2713_v59, %v1539_v53  ;;  %v1187_v49 = vsub.f32 %v1059_v38, %v1123_v7  ;;  %v1186_v36 = vsub.f32 %v1058_v50, %v1122_v40  ;;  %725 = vadd.xlane.f32.xlu1 %v2902_v12  ;;  %723 = vadd.xlane.f32.xlu0 %v2913_v35  ;;  %v2951_v7 = vmul.f32 0.010416667, %v2879_v43 }
 0x1c5   :  { %1675 = vst [vmem:[#allocation2 + $0x128] sm:$0xff] %v1611_v8  ;;  %v1007_v41 = vpop.xlane.xlu1 %1006  ;;  %v1005_v62 = vpop.xlane.xlu0 %1004 }
 0x1c6   :  { %1674 = vst [vmem:[#allocation2 + $0x120] sm:$0xff] %v1610_v1  ;;  %v1251_v34 = vadd.f32 1e-05, %v1187_v49  ;;  %v1250_v19 = vadd.f32 1e-05, %v1186_v36  ;;  %v1152_v1 = vmul.f32 %v2951_v7, %v2951_v7  ;;  %v3423_v49 = vld [vmem:[#allocation15_spill] sm:$0xff] }
 0x1c7   :  { %v1091_v3 = vmul.f32 0.010416667, %v1007_v41  ;;  %v1090_v61 = vmul.f32 0.010416667, %v1005_v62  ;;  %v2965_v36 = vadd.f32 %v2898_v31, %v3423_v49  ;;  %v3424_v62 = vld [vmem:[#allocation6_spill] sm:$0xff] }
 0x1c8   :  { %1969 = vrsqrt.f32 %v1251_v34  ;;  %789 = vadd.xlane.f32.xlu1 %v2923_v10  ;;  %787 = vadd.xlane.f32.xlu0 %v2932_v52 }
 0x1c9   :  { %v1219_v57 = vsub.f32 %v1091_v3, %v1155_v39  ;;  %1971 = vrsqrt.f32 %v1250_v19  ;;  %v1218_v15 = vsub.f32 %v1090_v61, %v1154_v9  ;;  %v939_v55 = vpop.xlane.xlu1 %938  ;;  %v937_v51 = vpop.xlane.xlu0 %936  ;;  %v1379_v39 = vsub.f32 %v3424_v62, %v2875_v44  ;;  %v3425_v61 = vld [vmem:[#allocation5_spill] sm:$0xff] }
 0x1ca   :  { %v1057_v63 = vmul.f32 0.010416667, %v939_v55  ;;  %v1056_v20 = vmul.f32 0.010416667, %v937_v51  ;;  %v886_v44 = vmul.f32 %v2913_v35, %v2913_v35 }
 0x1cb   :  { %v1283_v56 = vadd.f32 1e-05, %v1219_v57  ;;  %v1282_v46 = vadd.f32 1e-05, %v1218_v15  ;;  %v1378_v57 = vsub.f32 %v3425_v61, %v2877_v23 }
 0x1cc   :  { %v1185_v40 = vsub.f32 %v1057_v63, %v1121_v48  ;;  %v1184_v37 = vsub.f32 %v1056_v20, %v1120_v11  ;;  %721 = vadd.xlane.f32.xlu1 %v2936_v33  ;;  %719 = vadd.xlane.f32.xlu0 %v2948_v45  ;;  %v887_v48 = vmul.f32 %v2902_v12, %v2902_v12 }
 0x1cd   :  { %1973 = vrsqrt.f32 %v1283_v56  ;;  %v1003_v53 = vpop.xlane.xlu1 %1002  ;;  %v1001_v38 = vpop.xlane.xlu0 %1000  ;;  %v3426_v56 = vld [vmem:[#allocation8_spill] sm:$0xff] }
 0x1ce   :  { %1975 = vrsqrt.f32 %v1282_v46  ;;  %v1249_v43 = vadd.f32 1e-05, %v1185_v40  ;;  %v1248_v50 = vadd.f32 1e-05, %v1184_v37  ;;  %v1089_v8 = vmul.f32 0.010416667, %v1003_v53 }
 0x1cf   :  { %v1088_v0 = vmul.f32 0.010416667, %v1001_v38  ;;  %v1411_v63 = vsub.f32 %v3426_v56, %v2905_v30  ;;  %v3427_v37 = vld [vmem:[#allocation7_spill] sm:$0xff] }
 0x1d0   :  { %1977 = vrsqrt.f32 %v1249_v43  ;;  %v1217_v41 = vsub.f32 %v1089_v8, %v1153_v60  ;;  %785 = vadd.xlane.f32.xlu1 %v2956_v24  ;;  %783 = vadd.xlane.f32.xlu0 %v2965_v36  ;;  %v1410_v53 = vsub.f32 %v3427_v37, %v2909_v4  ;;  %v885_v60 = vmul.f32 %v2936_v33, %v2936_v33 }
 0x1d1   :  { %1979 = vrsqrt.f32 %v1248_v50  ;;  %v1216_v34 = vsub.f32 %v1088_v0, %v1152_v1  ;;  %v694_v19 = vpop.xlane.xlu1 %693  ;;  %v692_v3 = vpop.xlane.xlu0 %691  ;;  %v884_v8 = vmul.f32 %v2948_v45, %v2948_v45  ;;  %v3428_v0 = vld [vmem:[#allocation10_spill] sm:$0xff] }
 0x1d2   :  { %v1970_v9 = vpop.eup %1969  ;;  %v1281_v31 = vadd.f32 1e-05, %v1217_v41  ;;  %v1377_v41 = vsub.f32 %v3428_v0, %v2917_v22 }
 0x1d3   :  { %v1972_v15 = vpop.eup %1971  ;;  %v1443_v55 = vmul.f32 %v1970_v9, %v1379_v39  ;;  %v1280_v51 = vadd.f32 1e-05, %v1216_v34  ;;  %v3429_v9 = vld [vmem:[#allocation9_spill] sm:$0xff] }
 0x1d4   :  { %v1442_v11 = vmul.f32 %v1972_v15, %v1378_v57  ;;  %1981 = vrsqrt.f32 %v1281_v31  ;;  %982 = vadd.xlane.f32.xlu1 %v887_v48  ;;  %980 = vadd.xlane.f32.xlu0 %v886_v44  ;;  %v1376_v61 = vsub.f32 %v3429_v9, %v2919_v58  ;;  %v917_v31 = vmul.f32 %v2956_v24, %v2956_v24 }
 0x1d5   :  { %v1514_v20 = vmul.f32 %v2695_v21, %v1443_v55  ;;  %1983 = vrsqrt.f32 %v1280_v51  ;;  %v758_v23 = vpop.xlane.xlu1 %757  ;;  %v2980_v46 = vpop.xlane.xlu0 %755  ;;  %v916_v55 = vmul.f32 %v2965_v36, %v2965_v36 }
 0x1d6   :  { %v1513_v38 = vmul.f32 %v2695_v21, %v1442_v11  ;;  %v3430_v11 = vld [vmem:[#allocation12_spill] sm:$0xff]  ;;  %v3025_v9 = vmul.f32 0.010416667, %v758_v23 }
 0x1d7   :  { %v1974_v40 = vpop.eup %1973  ;;  %v1585_v50 = vadd.f32 %v2713_v59, %v1514_v20  ;;  %v1409_v58 = vsub.f32 %v3430_v11, %v2941_v32  ;;  %v3008_v20 = vmul.f32 0.010416667, %v692_v3  ;;  %v919_v32 = vmul.f32 %v2923_v10, %v2923_v10 }
 0x1d8   :  { %v1976_v43 = vpop.eup %1975  ;;  %v1475_v30 = vmul.f32 %v1974_v40, %v1411_v63  ;;  %v1584_v1 = vadd.f32 %v2713_v59, %v1513_v38  ;;  %978 = vadd.xlane.f32.xlu1 %v885_v60  ;;  %976 = vadd.xlane.f32.xlu0 %v884_v8  ;;  %v3006_v63 = vmul.f32 0.010416667, %v694_v19  ;;  %v3431_v38 = vld [vmem:[#allocation11_spill] sm:$0xff]  ;;  %v918_v3 = vmul.f32 %v2932_v52, %v2932_v52 }
 0x1d9   :  { %v1474_v49 = vmul.f32 %v1976_v43, %v1410_v53  ;;  %1649 = vst [vmem:[#allocation2 + $0x58] sm:$0xff] %v1585_v50  ;;  %v690_v62 = vpop.xlane.xlu1 %689  ;;  %v688_v39 = vpop.xlane.xlu0 %687  ;;  %v1408_v60 = vsub.f32 %v3431_v38, %v2951_v7  ;;  %v1126_v0 = vmul.f32 %v3008_v20, %v3008_v20  ;;  %v1159_v23 = vmul.f32 %v3025_v9, %v3025_v9 }
 0x1da   :  { %v1546_v4 = vmul.f32 %v2695_v21, %v1475_v30  ;;  %v1978_v34 = vpop.eup %1977  ;;  %1648 = vst [vmem:[#allocation2 + $0x50] sm:$0xff] %v1584_v1 }
 0x1db   :  { %v1545_v57 = vmul.f32 %v2695_v21, %v1474_v49  ;;  %v1980_v48 = vpop.eup %1979  ;;  %v1441_v22 = vmul.f32 %v1978_v34, %v1377_v41  ;;  %v1127_v49 = vmul.f32 %v3006_v63, %v3006_v63 }
 0x1dc   :  { %v1617_v15 = vadd.f32 %v2713_v59, %v1546_v4  ;;  %v1440_v44 = vmul.f32 %v1980_v48, %v1376_v61  ;;  %1042 = vadd.xlane.f32.xlu1 %v917_v31  ;;  %1040 = vadd.xlane.f32.xlu0 %v916_v55  ;;  %v3029_v48 = vmul.f32 0.010416667, %v2980_v46 }
 0x1dd   :  { %v1616_v51 = vadd.f32 %v2713_v59, %v1545_v57  ;;  %v1512_v56 = vmul.f32 %v2695_v21, %v1441_v22  ;;  %v754_v40 = vpop.xlane.xlu1 %753  ;;  %v752_v37 = vpop.xlane.xlu0 %751 }
 0x1de   :  { %1681 = vst [vmem:[#allocation2 + $0x158] sm:$0xff] %v1617_v15  ;;  %v1982_v53 = vpop.eup %1981  ;;  %v1511_v43 = vmul.f32 %v2695_v21, %v1440_v44  ;;  %v3034_v44 = vmul.f32 0.010416667, %v688_v39  ;;  %v1158_v46 = vmul.f32 %v3029_v48, %v3029_v48  ;;  %v3042_v39 = vmul.f32 0.010416667, %v754_v40 }
 0x1df   :  { %1680 = vst [vmem:[#allocation2 + $0x150] sm:$0xff] %v1616_v51  ;;  %v1984_v50 = vpop.eup %1983  ;;  %v1583_v30 = vadd.f32 %v2713_v59, %v1512_v56  ;;  %v1473_v19 = vmul.f32 %v1982_v53, %v1409_v58  ;;  %v3032_v51 = vmul.f32 0.010416667, %v690_v62 }
 0x1e0   :  { %v1582_v8 = vadd.f32 %v2713_v59, %v1511_v43  ;;  %v1472_v1 = vmul.f32 %v1984_v50, %v1408_v60  ;;  %1046 = vadd.xlane.f32.xlu1 %v919_v32  ;;  %1044 = vadd.xlane.f32.xlu0 %v918_v3 }
 0x1e1   :  { %1647 = vst [vmem:[#allocation2 + $0x48] sm:$0xff] %v1583_v30  ;;  %v1544_v7 = vmul.f32 %v2695_v21, %v1473_v19  ;;  %v951_v41 = vpop.xlane.xlu1 %950  ;;  %v949_v4 = vpop.xlane.xlu0 %948  ;;  %v1125_v62 = vmul.f32 %v3032_v51, %v3032_v51  ;;  %v1124_v19 = vmul.f32 %v3034_v44, %v3034_v44 }
 0x1e2   :  { %1646 = vst [vmem:[#allocation2 + $0x40] sm:$0xff] %v1582_v8  ;;  %v1543_v34 = vmul.f32 %v2695_v21, %v1472_v1  ;;  %v1063_v61 = vmul.f32 0.010416667, %v951_v41  ;;  %v1062_v57 = vmul.f32 0.010416667, %v949_v4 }
 0x1e3   :  { %v1615_v31 = vadd.f32 %v2713_v59, %v1544_v7  ;;  %v3046_v7 = vmul.f32 0.010416667, %v752_v37 }
 0x1e4   :  { %v1614_v15 = vadd.f32 %v2713_v59, %v1543_v34  ;;  %v1191_v22 = vsub.f32 %v1063_v61, %v1127_v49  ;;  %v1190_v55 = vsub.f32 %v1062_v57, %v1126_v0  ;;  %v1157_v34 = vmul.f32 %v3042_v39, %v3042_v39 }
 0x1e5   :  { %1679 = vst [vmem:[#allocation2 + $0x148] sm:$0xff] %v1615_v31  ;;  %v1015_v11 = vpop.xlane.xlu1 %1014  ;;  %v1013_v58 = vpop.xlane.xlu0 %1012 }
 0x1e6   :  { %1678 = vst [vmem:[#allocation2 + $0x140] sm:$0xff] %v1614_v15  ;;  %v1255_v56 = vadd.f32 1e-05, %v1191_v22  ;;  %v1254_v53 = vadd.f32 1e-05, %v1190_v55  ;;  %v1156_v15 = vmul.f32 %v3046_v7, %v3046_v7  ;;  %v3432_v55 = vld [vmem:[#allocation14_spill] sm:$0xff] }
 0x1e7   :  { %v1095_v38 = vmul.f32 0.010416667, %v1015_v11  ;;  %v1094_v60 = vmul.f32 0.010416667, %v1013_v58  ;;  %v1383_v11 = vsub.f32 %v3432_v55, %v3006_v63 }
 0x1e8   :  { %1985 = vrsqrt.f32 %v1255_v56 }
 0x1e9   :  { %v1223_v43 = vsub.f32 %v1095_v38, %v1159_v23  ;;  %1987 = vrsqrt.f32 %v1254_v53  ;;  %v1222_v32 = vsub.f32 %v1094_v60, %v1158_v46  ;;  %v947_v50 = vpop.xlane.xlu1 %946  ;;  %v945_v30 = vpop.xlane.xlu0 %944  ;;  %v3433_v38 = vld [vmem:[#allocation13_spill] sm:$0xff] }
 0x1ea   :  { %v1061_v8 = vmul.f32 0.010416667, %v947_v50  ;;  %v1060_v1 = vmul.f32 0.010416667, %v945_v30  ;;  %v1382_v46 = vsub.f32 %v3433_v38, %v3008_v20  ;;  %v3434_v30 = vld [vmem:[#allocation17_spill] sm:$0xff] }
 0x1eb   :  { %v1287_v3 = vadd.f32 1e-05, %v1223_v43  ;;  %v1286_v49 = vadd.f32 1e-05, %v1222_v32 }
 0x1ec   :  { %v1189_v0 = vsub.f32 %v1061_v8, %v1125_v62  ;;  %v1188_v41 = vsub.f32 %v1060_v1, %v1124_v19  ;;  %v1415_v19 = vsub.f32 %v3434_v30, %v3025_v9  ;;  %v3436_v9 = vld [vmem:[#allocation19_spill] sm:$0xff] }
 0x1ed   :  { %1989 = vrsqrt.f32 %v1287_v3  ;;  %v1011_v4 = vpop.xlane.xlu1 %1010  ;;  %v1009_v40 = vpop.xlane.xlu0 %1008 }
 0x1ee   :  { %1991 = vrsqrt.f32 %v1286_v49  ;;  %v1253_v61 = vadd.f32 1e-05, %v1189_v0  ;;  %v1252_v57 = vadd.f32 1e-05, %v1188_v41  ;;  %v1093_v31 = vmul.f32 0.010416667, %v1011_v4 }
 0x1ef   :  { %v1092_v22 = vmul.f32 0.010416667, %v1009_v40  ;;  %v3435_v49 = vld [vmem:[#allocation16_spill] sm:$0xff] }
 0x1f0   :  { %1993 = vrsqrt.f32 %v1253_v61  ;;  %v1221_v37 = vsub.f32 %v1093_v31, %v1157_v34  ;;  %v1414_v0 = vsub.f32 %v3435_v49, %v3029_v48  ;;  %v3437_v48 = vld [vmem:[#allocation18_spill] sm:$0xff] }
 0x1f1   :  { %1995 = vrsqrt.f32 %v1252_v57  ;;  %v1220_v58 = vsub.f32 %v1092_v22, %v1156_v15  ;;  %v702_v23 = vpop.xlane.xlu1 %701  ;;  %v700_v56 = vpop.xlane.xlu0 %699  ;;  %v1381_v57 = vsub.f32 %v3436_v9, %v3032_v51  ;;  %v1380_v55 = vsub.f32 %v3437_v48, %v3034_v44  ;;  %v3438_v51 = vld [vmem:[#allocation21_spill] sm:$0xff]  ;;  %v3439_v44 = vld [vmem:[#allocation20_spill] sm:$0xff] }
 0x1f2   :  { %v1986_v53 = vpop.eup %1985  ;;  %v1285_v60 = vadd.f32 1e-05, %v1221_v37 }
 0x1f3   :  { %v1988_v43 = vpop.eup %1987  ;;  %v1447_v62 = vmul.f32 %v1986_v53, %v1383_v11  ;;  %v1284_v32 = vadd.f32 1e-05, %v1220_v58 }
 0x1f4   :  { %v1446_v50 = vmul.f32 %v1988_v43, %v1382_v46  ;;  %1997 = vrsqrt.f32 %v1285_v60  ;;  %v1413_v43 = vsub.f32 %v3438_v51, %v3042_v39 }
 0x1f5   :  { %v1518_v3 = vmul.f32 %v2695_v21, %v1447_v62  ;;  %1999 = vrsqrt.f32 %v1284_v32  ;;  %v766_v63 = vpop.xlane.xlu1 %765  ;;  %v764_v8 = vpop.xlane.xlu0 %763 }
 0x1f6   :  { %v1517_v20 = vmul.f32 %v2695_v21, %v1446_v50 }
 0x1f7   :  { %v1990_v1 = vpop.eup %1989  ;;  %v1589_v4 = vadd.f32 %v2713_v59, %v1518_v3 }
 0x1f8   :  { %v1992_v41 = vpop.eup %1991  ;;  %v1479_v40 = vmul.f32 %v1990_v1, %v1415_v19  ;;  %v1588_v34 = vadd.f32 %v2713_v59, %v1517_v20  ;;  %v1412_v19 = vsub.f32 %v3439_v44, %v3046_v7  ;;  %v3078_v1 = vmul.f32 0.010416667, %v702_v23 }
 0x1f9   :  { %v1478_v61 = vmul.f32 %v1992_v41, %v1414_v0  ;;  %1653 = vst [vmem:[#allocation2 + $0x78] sm:$0xff] %v1589_v4  ;;  %v698_v15 = vpop.xlane.xlu1 %697  ;;  %v696_v22 = vpop.xlane.xlu0 %695  ;;  %v3081_v41 = vmul.f32 0.010416667, %v700_v56 }
 0x1fa   :  { %v1550_v31 = vmul.f32 %v2695_v21, %v1479_v40  ;;  %v1994_v37 = vpop.eup %1993  ;;  %1652 = vst [vmem:[#allocation2 + $0x70] sm:$0xff] %v1588_v34  ;;  %v1131_v23 = vmul.f32 %v3078_v1, %v3078_v1  ;;  %v3102_v51 = vmul.f32 0.010416667, %v696_v22 }
 0x1fb   :  { %v1549_v11 = vmul.f32 %v2695_v21, %v1478_v61  ;;  %v1996_v58 = vpop.eup %1995  ;;  %v1445_v38 = vmul.f32 %v1994_v37, %v1381_v57  ;;  %v3088_v61 = vmul.f32 0.010416667, %v766_v63  ;;  %v3093_v37 = vmul.f32 0.010416667, %v764_v8 }
 0x1fc   :  { %v1621_v53 = vadd.f32 %v2713_v59, %v1550_v31  ;;  %v1444_v60 = vmul.f32 %v1996_v58, %v1380_v55  ;;  %v1130_v31 = vmul.f32 %v3081_v41, %v3081_v41 }
 0x1fd   :  { %v1620_v46 = vadd.f32 %v2713_v59, %v1549_v11  ;;  %v1516_v62 = vmul.f32 %v2695_v21, %v1445_v38  ;;  %v762_v32 = vpop.xlane.xlu1 %761  ;;  %v760_v50 = vpop.xlane.xlu0 %759  ;;  %v1163_v63 = vmul.f32 %v3088_v61, %v3088_v61  ;;  %v1162_v8 = vmul.f32 %v3093_v37, %v3093_v37 }
 0x1fe   :  { %1685 = vst [vmem:[#allocation2 + $0x178] sm:$0xff] %v1621_v53  ;;  %v1998_v30 = vpop.eup %1997  ;;  %v1515_v3 = vmul.f32 %v2695_v21, %v1444_v60  ;;  %v3098_v53 = vmul.f32 0.010416667, %v698_v15  ;;  %v3106_v15 = vmul.f32 0.010416667, %v762_v32 }
 0x1ff   :  { %1684 = vst [vmem:[#allocation2 + $0x170] sm:$0xff] %v1620_v46  ;;  %v2000_v49 = vpop.eup %1999  ;;  %v1587_v0 = vadd.f32 %v2713_v59, %v1516_v62  ;;  %v1477_v20 = vmul.f32 %v1998_v30, %v1413_v43  ;;  %v3110_v22 = vmul.f32 0.010416667, %v760_v50 }
 0x200   :  { %v1586_v39 = vadd.f32 %v2713_v59, %v1515_v3  ;;  %v1476_v4 = vmul.f32 %v2000_v49, %v1412_v19  ;;  %v1129_v19 = vmul.f32 %v3098_v53, %v3098_v53 }
 0x201   :  { %1651 = vst [vmem:[#allocation2 + $0x68] sm:$0xff] %v1587_v0  ;;  %v1548_v40 = vmul.f32 %v2695_v21, %v1477_v20  ;;  %v959_v34 = vpop.xlane.xlu1 %958  ;;  %v957_v57 = vpop.xlane.xlu0 %956  ;;  %v1128_v20 = vmul.f32 %v3102_v51, %v3102_v51 }
 0x202   :  { %1650 = vst [vmem:[#allocation2 + $0x60] sm:$0xff] %v1586_v39  ;;  %v1547_v7 = vmul.f32 %v2695_v21, %v1476_v4  ;;  %v1067_v9 = vmul.f32 0.010416667, %v959_v34  ;;  %v1066_v48 = vmul.f32 0.010416667, %v957_v57 }
 0x203   :  { %v1619_v56 = vadd.f32 %v2713_v59, %v1548_v40 }
 0x204   :  { %v1618_v55 = vadd.f32 %v2713_v59, %v1547_v7  ;;  %v1195_v11 = vsub.f32 %v1067_v9, %v1131_v23  ;;  %v1194_v21 = vsub.f32 %v1066_v48, %v1130_v31  ;;  %v1161_v23 = vmul.f32 %v3106_v15, %v3106_v15 }
 0x205   :  { %1683 = vst [vmem:[#allocation2 + $0x168] sm:$0xff] %v1619_v56  ;;  %v1023_v58 = vpop.xlane.xlu1 %1022  ;;  %v1021_v60 = vpop.xlane.xlu0 %1020  ;;  %v1160_v56 = vmul.f32 %v3110_v22, %v3110_v22 }
 0x206   :  { %1682 = vst [vmem:[#allocation2 + $0x160] sm:$0xff] %v1618_v55  ;;  %v1259_v38 = vadd.f32 1e-05, %v1195_v11  ;;  %v1099_v46 = vmul.f32 0.010416667, %v1023_v58  ;;  %v3440_v55 = vld [vmem:[#allocation23_spill] sm:$0xff] }
 0x207   :  { %v1258_v43 = vadd.f32 1e-05, %v1194_v21  ;;  %v1098_v59 = vmul.f32 0.010416667, %v1021_v60  ;;  %v1387_v11 = vsub.f32 %v3440_v55, %v3078_v1  ;;  %v3125_v1 = vld [vmem:[%s3371_s3] ss:$0 sm:$0xff] }
 0x208   :  { %2001 = vrsqrt.f32 %v1259_v38  ;;  %v1227_v62 = vsub.f32 %v1099_v46, %v1163_v63  ;;  %v3441_v38 = vld [vmem:[#allocation22_spill] sm:$0xff]  ;;  %s2092_s3 = smov [#allocation2]  }
 0x209   :  { %2003 = vrsqrt.f32 %v1258_v43  ;;  %v1226_v30 = vsub.f32 %v1098_v59, %v1162_v8  ;;  %v955_v44 = vpop.xlane.xlu1 %954  ;;  %v953_v0 = vpop.xlane.xlu0 %952  ;;  %v1386_v46 = vsub.f32 %v3441_v38, %v3081_v41 }
 0x20a   :  { %v1291_v3 = vadd.f32 1e-05, %v1227_v62  ;;  %v1065_v49 = vmul.f32 0.010416667, %v955_v44  ;;  %v1064_v4 = vmul.f32 0.010416667, %v953_v0 }
 0x20b   :  { %v1290_v39 = vadd.f32 1e-05, %v1226_v30  ;;  %v3442_v44 = vld [vmem:[#allocation25_spill] sm:$0xff]  ;;  %v3443_v0 = vld [vmem:[#allocation24_spill] sm:$0xff] }
 0x20c   :  { %2005 = vrsqrt.f32 %v1291_v3  ;;  %v1193_v40 = vsub.f32 %v1065_v49, %v1129_v19  ;;  %v1192_v34 = vsub.f32 %v1064_v4, %v1128_v20  ;;  %v1419_v19 = vsub.f32 %v3442_v44, %v3088_v61  ;;  %v3134_v61 = vld [vmem:[%s3372_s4] ss:$0 sm:$0xff]  ;;  %s1707_s4 = sshll.u32 %s2092_s3, 4  ;;  %s1708_s4 = int_to_ptr.vmem [resolvable:$true] %s1707_s4 }
 0x20d   :  { %2007 = vrsqrt.f32 %v1290_v39  ;;  %v1019_v7 = vpop.xlane.xlu1 %1018  ;;  %v1017_v57 = vpop.xlane.xlu0 %1016  ;;  %v1418_v20 = vsub.f32 %v3443_v0, %v3093_v37  ;;  %s2068_s20 = scalar_lea.vmem %s1708_s4, 8192  ;;  %p2073_p1 = scmp.lt.s32.totalorder %s1708_s4, %s1708_s4 }
 0x20e   :  { %v1257_v32 = vadd.f32 1e-05, %v1193_v40  ;;  %v1097_v9 = vmul.f32 0.010416667, %v1019_v7  ;;  %v1256_v31 = vadd.f32 1e-05, %v1192_v34  ;;  %p2069_p0 = scmp.ne.s32.totalorder %s1708_s4, %s2068_s20  ;;  %p2074_p2 = scmp.lt.s32.totalorder %s2068_s20, %s2068_s20 }
 0x20f   :  { %v1096_v48 = vmul.f32 0.010416667, %v1017_v57 }
 0x210   :  { %2009 = vrsqrt.f32 %v1257_v32  ;;  %v1225_v50 = vsub.f32 %v1097_v9, %v1161_v23  ;;  %v3444_v9 = vld [vmem:[#allocation27_spill] sm:$0xff]  ;;  %p2075_p3 = por %p2074_p2, %p2073_p1 }
 0x211   :  { %2011 = vrsqrt.f32 %v1256_v31  ;;  %v1224_v21 = vsub.f32 %v1096_v48, %v1160_v56  ;;  %v710_v58 = vpop.xlane.xlu1 %709  ;;  %v708_v8 = vpop.xlane.xlu0 %707  ;;  %v1385_v57 = vsub.f32 %v3444_v9, %v3098_v53  ;;  %v3445_v48 = vld [vmem:[#allocation26_spill] sm:$0xff]  ;;  %v3446_v53 = vld [vmem:[#allocation29_spill] sm:$0xff] }
 0x212   :  { %v2002_v63 = vpop.eup %2001  ;;  %v1289_v60 = vadd.f32 1e-05, %v1225_v50  ;;  %v1384_v50 = vsub.f32 %v3445_v48, %v3102_v51  ;;  %v3447_v51 = vld [vmem:[#allocation28_spill] sm:$0xff]  ;;  %p2076_p4 = pnand %p2075_p3, %p2069_p0 }
 0x213   :  { %v2004_v43 = vpop.eup %2003  ;;  %v1451_v59 = vmul.f32 %v2002_v63, %v1387_v11  ;;  %v1288_v62 = vadd.f32 1e-05, %v1224_v21  ;;  %v1416_v44 = vsub.f32 %v3447_v51, %v3110_v22 }
 0x214   :  { %v1450_v30 = vmul.f32 %v2004_v43, %v1386_v46  ;;  %2013 = vrsqrt.f32 %v1289_v60  ;;  %v1417_v43 = vsub.f32 %v3446_v53, %v3106_v15 }
 0x215   :  { %v1522_v3 = vmul.f32 %v3125_v1, %v1451_v59  ;;  %2015 = vrsqrt.f32 %v1288_v62  ;;  %v774_v49 = vpop.xlane.xlu1 %773  ;;  %v772_v4 = vpop.xlane.xlu0 %771 }
 0x216   :  { %v2006_v41 = vpop.eup %2005  ;;  %v1521_v39 = vmul.f32 %v3125_v1, %v1450_v30 }
 0x217   :  { %v2008_v40 = vpop.eup %2007  ;;  %v1593_v34 = vadd.f32 %v3134_v61, %v1522_v3  ;;  %v1483_v7 = vmul.f32 %v2006_v41, %v1419_v19  ;;  %v3152_v3 = vmul.f32 0.010416667, %v710_v58 }
 0x218   :  { %v1592_v23 = vadd.f32 %v3134_v61, %v1521_v39  ;;  %v1482_v32 = vmul.f32 %v2008_v40, %v1418_v20  ;;  %v3155_v40 = vmul.f32 0.010416667, %v708_v8 }
 0x219   :  { %1657 = vst [vmem:[#allocation2 + $0x98] sm:$0xff] %v1593_v34  ;;  %v1554_v37 = vmul.f32 %v3125_v1, %v1483_v7  ;;  %v706_v56 = vpop.xlane.xlu1 %705  ;;  %v704_v11 = vpop.xlane.xlu0 %703  ;;  %v1135_v58 = vmul.f32 %v3152_v3, %v3152_v3 }
 0x21a   :  { %v2010_v31 = vpop.eup %2009  ;;  %1656 = vst [vmem:[#allocation2 + $0x90] sm:$0xff] %v1592_v23  ;;  %v1553_v55 = vmul.f32 %v3125_v1, %v1482_v32  ;;  %v3162_v32 = vmul.f32 0.010416667, %v774_v49 }
 0x21b   :  { %v2012_v21 = vpop.eup %2011  ;;  %v1625_v63 = vadd.f32 %v3134_v61, %v1554_v37  ;;  %v1449_v38 = vmul.f32 %v2010_v31, %v1385_v57  ;;  %v1134_v37 = vmul.f32 %v3155_v40, %v3155_v40  ;;  %v3167_v31 = vmul.f32 0.010416667, %v772_v4 }
 0x21c   :  { %v1624_v46 = vadd.f32 %v3134_v61, %v1553_v55  ;;  %v1448_v60 = vmul.f32 %v2012_v21, %v1384_v50  ;;  %v1167_v49 = vmul.f32 %v3162_v32, %v3162_v32 }
 0x21d   :  { %1689 = vst [vmem:[#allocation2 + $0x198] sm:$0xff] %v1625_v63  ;;  %v1520_v59 = vmul.f32 %v3125_v1, %v1449_v38  ;;  %v770_v62 = vpop.xlane.xlu1 %769  ;;  %v768_v41 = vpop.xlane.xlu0 %767  ;;  %v3172_v38 = vmul.f32 0.010416667, %v706_v56  ;;  %v1166_v4 = vmul.f32 %v3167_v31, %v3167_v31 }
 0x21e   :  { %v2014_v30 = vpop.eup %2013  ;;  %1688 = vst [vmem:[#allocation2 + $0x190] sm:$0xff] %v1624_v46  ;;  %v1519_v19 = vmul.f32 %v3125_v1, %v1448_v60  ;;  %v3180_v56 = vmul.f32 0.010416667, %v770_v62 }
 0x21f   :  { %v2016_v0 = vpop.eup %2015  ;;  %v1591_v20 = vadd.f32 %v3134_v61, %v1520_v59  ;;  %v1481_v39 = vmul.f32 %v2014_v30, %v1417_v43  ;;  %v3176_v43 = vmul.f32 0.010416667, %v704_v11  ;;  %v3184_v11 = vmul.f32 0.010416667, %v768_v41 }
 0x220   :  { %v1590_v15 = vadd.f32 %v3134_v61, %v1519_v19  ;;  %v1480_v34 = vmul.f32 %v2016_v0, %v1416_v44  ;;  %v1133_v0 = vmul.f32 %v3172_v38, %v3172_v38 }
 0x221   :  { %1655 = vst [vmem:[#allocation2 + $0x88] sm:$0xff] %v1591_v20  ;;  %v1552_v7 = vmul.f32 %v3125_v1, %v1481_v39  ;;  %v967_v23 = vpop.xlane.xlu1 %966  ;;  %v965_v57 = vpop.xlane.xlu0 %964 }
 0x222   :  { %1654 = vst [vmem:[#allocation2 + $0x80] sm:$0xff] %v1590_v15  ;;  %v1551_v22 = vmul.f32 %v3125_v1, %v1480_v34  ;;  %v1071_v9 = vmul.f32 0.010416667, %v967_v23  ;;  %v1070_v48 = vmul.f32 0.010416667, %v965_v57  ;;  %v1132_v34 = vmul.f32 %v3176_v43, %v3176_v43 }
 0x223   :  { %v1623_v8 = vadd.f32 %v3134_v61, %v1552_v7  ;;  %v1165_v57 = vmul.f32 %v3180_v56, %v3180_v56 }
 0x224   :  { %v1622_v50 = vadd.f32 %v3134_v61, %v1551_v22  ;;  %v1199_v55 = vsub.f32 %v1071_v9, %v1135_v58  ;;  %v1198_v21 = vsub.f32 %v1070_v48, %v1134_v37  ;;  %v1164_v48 = vmul.f32 %v3184_v11, %v3184_v11 }
 0x225   :  { %1687 = vst [vmem:[#allocation2 + $0x188] sm:$0xff] %v1623_v8  ;;  %v1031_v63 = vpop.xlane.xlu1 %1030  ;;  %v1029_v53 = vpop.xlane.xlu0 %1028 }
 0x226   :  { %1686 = vst [vmem:[#allocation2 + $0x180] sm:$0xff] %v1622_v50  ;;  %v1263_v46 = vadd.f32 1e-05, %v1199_v55  ;;  %v1103_v60 = vmul.f32 0.010416667, %v1031_v63 }
 0x227   :  { %v1262_v59 = vadd.f32 1e-05, %v1198_v21  ;;  %v1102_v30 = vmul.f32 0.010416667, %v1029_v53  ;;  %v1391_v21 = vsub.f32 %v2647_v28, %v3152_v3 }
 0x228   :  { %2017 = vrsqrt.f32 %v1263_v46  ;;  %v1231_v51 = vsub.f32 %v1103_v60, %v1167_v49  ;;  %v1390_v60 = vsub.f32 %v2653_v18, %v3155_v40 }
 0x229   :  { %2019 = vrsqrt.f32 %v1262_v59  ;;  %v1230_v44 = vsub.f32 %v1102_v30, %v1166_v4  ;;  %v963_v19 = vpop.xlane.xlu1 %962  ;;  %v961_v15 = vpop.xlane.xlu0 %960 }
 0x22a   :  { %v1295_v20 = vadd.f32 1e-05, %v1231_v51  ;;  %v1069_v39 = vmul.f32 0.010416667, %v963_v19  ;;  %v1068_v23 = vmul.f32 0.010416667, %v961_v15  ;;  %v1423_v19 = vsub.f32 %v2660_v26, %v3162_v32 }
 0x22b   :  { %v1294_v7 = vadd.f32 1e-05, %v1230_v44  ;;  %v1389_v26 = vsub.f32 %v2678_v54, %v3172_v38  ;;  %v1421_v54 = vsub.f32 %v2699_v2, %v3180_v56 }
 0x22c   :  { %2021 = vrsqrt.f32 %v1295_v20  ;;  %v1197_v22 = vsub.f32 %v1069_v39, %v1133_v0  ;;  %v1196_v58 = vsub.f32 %v1068_v23, %v1132_v34  ;;  %v1422_v20 = vsub.f32 %v2667_v5, %v3167_v31 }
 0x22d   :  { %2023 = vrsqrt.f32 %v1294_v7  ;;  %v1027_v9 = vpop.xlane.xlu1 %1026  ;;  %v1025_v37 = vpop.xlane.xlu0 %1024  ;;  %v1388_v5 = vsub.f32 %v2687_v17, %v3176_v43  ;;  %v1420_v17 = vsub.f32 %v2708_v25, %v3184_v11 }
 0x22e   :  { %v1261_v62 = vadd.f32 1e-05, %v1197_v22  ;;  %v1101_v8 = vmul.f32 0.010416667, %v1027_v9  ;;  %v1260_v50 = vadd.f32 1e-05, %v1196_v58 }
 0x22f   :  { %v1100_v55 = vmul.f32 0.010416667, %v1025_v37 }
 0x230   :  { %2025 = vrsqrt.f32 %v1261_v62  ;;  %v1229_v41 = vsub.f32 %v1101_v8, %v1165_v57 }
 0x231   :  { %2027 = vrsqrt.f32 %v1260_v50  ;;  %v1228_v63 = vsub.f32 %v1100_v55, %v1164_v48  ;;  %v718_v49 = vpop.xlane.xlu1 %717  ;;  %v716_v4 = vpop.xlane.xlu0 %715 }
 0x232   :  { %v2018_v46 = vpop.eup %2017  ;;  %v1293_v53 = vadd.f32 1e-05, %v1229_v41  ;;  %v3216_v41 = vmul.f32 0.010416667, %v718_v49 }
 0x233   :  { %v2020_v59 = vpop.eup %2019  ;;  %v1455_v30 = vmul.f32 %v2018_v46, %v1391_v21  ;;  %v1292_v51 = vadd.f32 1e-05, %v1228_v63 }
 0x234   :  { %v1454_v44 = vmul.f32 %v2020_v59, %v1390_v60  ;;  %2029 = vrsqrt.f32 %v1293_v53  ;;  %v3219_v53 = vmul.f32 0.010416667, %v716_v4  ;;  %v1139_v11 = vmul.f32 %v3216_v41, %v3216_v41 }
 0x235   :  { %v1526_v0 = vmul.f32 %v3125_v1, %v1455_v30  ;;  %2031 = vrsqrt.f32 %v1292_v51  ;;  %v782_v28 = vpop.xlane.xlu1 %781  ;;  %v780_v40 = vpop.xlane.xlu0 %779 }
 0x236   :  { %v2022_v3 = vpop.eup %2021  ;;  %v1525_v18 = vmul.f32 %v3125_v1, %v1454_v44  ;;  %v3226_v49 = vmul.f32 0.010416667, %v782_v28 }
 0x237   :  { %v2024_v39 = vpop.eup %2023  ;;  %v1597_v15 = vadd.f32 %v3134_v61, %v1526_v0  ;;  %v1487_v34 = vmul.f32 %v2022_v3, %v1423_v19  ;;  %v1138_v19 = vmul.f32 %v3219_v53, %v3219_v53  ;;  %v3231_v0 = vmul.f32 0.010416667, %v780_v40 }
 0x238   :  { %v1596_v7 = vadd.f32 %v3134_v61, %v1525_v18  ;;  %v1486_v23 = vmul.f32 %v2024_v39, %v1422_v20  ;;  %v1171_v28 = vmul.f32 %v3226_v49, %v3226_v49 }
 0x239   :  { %1661 = vst [vmem:[#allocation2 + $0xb8] sm:$0xff] %v1597_v15  ;;  %v1558_v32 = vmul.f32 %v3125_v1, %v1487_v34  ;;  %v714_v22 = vpop.xlane.xlu1 %713  ;;  %v712_v9 = vpop.xlane.xlu0 %711  ;;  %v1170_v40 = vmul.f32 %v3231_v0, %v3231_v0 }
 0x23a   :  { %v2026_v58 = vpop.eup %2025  ;;  %1660 = vst [vmem:[#allocation2 + $0xb0] sm:$0xff] %v1596_v7  ;;  %v1557_v31 = vmul.f32 %v3125_v1, %v1486_v23  ;;  %v3236_v34 = vmul.f32 0.010416667, %v714_v22 }
 0x23b   :  { %v2028_v57 = vpop.eup %2027  ;;  %v1629_v62 = vadd.f32 %v3134_v61, %v1558_v32  ;;  %v1453_v8 = vmul.f32 %v2026_v58, %v1389_v26  ;;  %v3240_v32 = vmul.f32 0.010416667, %v712_v9 }
 0x23c   :  { %v1628_v37 = vadd.f32 %v3134_v61, %v1557_v31  ;;  %v1452_v48 = vmul.f32 %v2028_v57, %v1388_v5 }
 0x23d   :  { %1693 = vst [vmem:[#allocation2 + $0x1b8] sm:$0xff] %v1629_v62  ;;  %v1524_v38 = vmul.f32 %v3125_v1, %v1453_v8  ;;  %v778_v50 = vpop.xlane.xlu1 %777  ;;  %v776_v21 = vpop.xlane.xlu0 %775  ;;  %v1137_v8 = vmul.f32 %v3236_v34, %v3236_v34 }
 0x23e   :  { %v2030_v55 = vpop.eup %2029  ;;  %1692 = vst [vmem:[#allocation2 + $0x1b0] sm:$0xff] %v1628_v37  ;;  %v1523_v43 = vmul.f32 %v3125_v1, %v1452_v48  ;;  %v3244_v22 = vmul.f32 0.010416667, %v778_v50  ;;  %v3248_v9 = vmul.f32 0.010416667, %v776_v21 }
 0x23f   :  { %v2032_v63 = vpop.eup %2031  ;;  %v1595_v46 = vadd.f32 %v3134_v61, %v1524_v38  ;;  %v1485_v60 = vmul.f32 %v2030_v55, %v1421_v54  ;;  %v1136_v38 = vmul.f32 %v3240_v32, %v3240_v32 }
 0x240   :  { %v1594_v2 = vadd.f32 %v3134_v61, %v1523_v43  ;;  %v1484_v56 = vmul.f32 %v2032_v63, %v1420_v17 }
 0x241   :  { %1659 = vst [vmem:[#allocation2 + $0xa8] sm:$0xff] %v1595_v46  ;;  %v1556_v59 = vmul.f32 %v3125_v1, %v1485_v60  ;;  %v975_v30 = vpop.xlane.xlu1 %974  ;;  %v973_v44 = vpop.xlane.xlu0 %972  ;;  %v1169_v60 = vmul.f32 %v3244_v22, %v3244_v22 }
 0x242   :  { %1658 = vst [vmem:[#allocation2 + $0xa0] sm:$0xff] %v1594_v2  ;;  %v1555_v25 = vmul.f32 %v3125_v1, %v1484_v56  ;;  %v1075_v51 = vmul.f32 0.010416667, %v975_v30  ;;  %v1074_v3 = vmul.f32 0.010416667, %v973_v44 }
 0x243   :  { %v1627_v4 = vadd.f32 %v3134_v61, %v1556_v59  ;;  %v1168_v59 = vmul.f32 %v3248_v9, %v3248_v9 }
 0x244   :  { %v1626_v20 = vadd.f32 %v3134_v61, %v1555_v25  ;;  %v1203_v18 = vsub.f32 %v1075_v51, %v1139_v11  ;;  %v1202_v39 = vsub.f32 %v1074_v3, %v1138_v19  ;;  %v1395_v11 = vsub.f32 %v2772_v47, %v3216_v41 }
 0x245   :  { %1691 = vst [vmem:[#allocation2 + $0x1a8] sm:$0xff] %v1627_v4  ;;  %v1039_v15 = vpop.xlane.xlu1 %1038  ;;  %v1037_v26 = vpop.xlane.xlu0 %1036  ;;  %v1394_v19 = vsub.f32 %v2782_v13, %v3219_v53 }
 0x246   :  { %1690 = vst [vmem:[#allocation2 + $0x1a0] sm:$0xff] %v1626_v20  ;;  %v1267_v7 = vadd.f32 1e-05, %v1203_v18  ;;  %v1107_v23 = vmul.f32 0.010416667, %v1039_v15 }
 0x247   :  { %v1266_v58 = vadd.f32 1e-05, %v1202_v39  ;;  %v1106_v5 = vmul.f32 0.010416667, %v1037_v26  ;;  %v1426_v26 = vsub.f32 %v2801_v29, %v3231_v0  ;;  %v1392_v29 = vsub.f32 %v2817_v6, %v3240_v32 }
 0x248   :  { %2033 = vrsqrt.f32 %v1267_v7  ;;  %v1235_v31 = vsub.f32 %v1107_v23, %v1171_v28  ;;  %v1427_v7 = vsub.f32 %v2792_v27, %v3226_v49  ;;  %v1393_v49 = vsub.f32 %v2805_v14, %v3236_v34 }
 0x249   :  { %2035 = vrsqrt.f32 %v1266_v58  ;;  %v1234_v57 = vsub.f32 %v1106_v5, %v1170_v40  ;;  %v971_v62 = vpop.xlane.xlu1 %970  ;;  %v969_v54 = vpop.xlane.xlu0 %968  ;;  %v1425_v14 = vsub.f32 %v2825_v16, %v3244_v22  ;;  %v1424_v6 = vsub.f32 %v2834_v42, %v3248_v9 }
 0x24a   :  { %v1299_v37 = vadd.f32 1e-05, %v1235_v31  ;;  %v1073_v48 = vmul.f32 0.010416667, %v971_v62  ;;  %v1072_v17 = vmul.f32 0.010416667, %v969_v54 }
 0x24b   :  { %v1298_v55 = vadd.f32 1e-05, %v1234_v57 }
 0x24c   :  { %2037 = vrsqrt.f32 %v1299_v37  ;;  %v1201_v43 = vsub.f32 %v1073_v48, %v1137_v8  ;;  %v1200_v63 = vsub.f32 %v1072_v17, %v1136_v38 }
 0x24d   :  { %2039 = vrsqrt.f32 %v1298_v55  ;;  %v1035_v46 = vpop.xlane.xlu1 %1034  ;;  %v1033_v56 = vpop.xlane.xlu0 %1032 }
 0x24e   :  { %v1265_v50 = vadd.f32 1e-05, %v1201_v43  ;;  %v1105_v2 = vmul.f32 0.010416667, %v1035_v46  ;;  %v1264_v30 = vadd.f32 1e-05, %v1200_v63 }
 0x24f   :  { %v1104_v25 = vmul.f32 0.010416667, %v1033_v56 }
 0x250   :  { %2041 = vrsqrt.f32 %v1265_v50  ;;  %v1233_v21 = vsub.f32 %v1105_v2, %v1169_v60 }
 0x251   :  { %2043 = vrsqrt.f32 %v1264_v30  ;;  %v1232_v51 = vsub.f32 %v1104_v25, %v1168_v59  ;;  %v726_v44 = vpop.xlane.xlu1 %725  ;;  %v724_v20 = vpop.xlane.xlu0 %723 }
 0x252   :  { %v2034_v4 = vpop.eup %2033  ;;  %v1297_v3 = vadd.f32 1e-05, %v1233_v21  ;;  %v3284_v46 = vmul.f32 0.010416667, %v726_v44  ;;  %v3287_v59 = vmul.f32 0.010416667, %v724_v20 }
 0x253   :  { %v2036_v18 = vpop.eup %2035  ;;  %v1459_v39 = vmul.f32 %v2034_v4, %v1395_v11  ;;  %v1296_v15 = vadd.f32 1e-05, %v1232_v51 }
 0x254   :  { %v1458_v28 = vmul.f32 %v2036_v18, %v1394_v19  ;;  %2045 = vrsqrt.f32 %v1297_v3  ;;  %v1143_v9 = vmul.f32 %v3284_v46, %v3284_v46  ;;  %v1142_v4 = vmul.f32 %v3287_v59, %v3287_v59 }
 0x255   :  { %v1530_v23 = vmul.f32 %v3125_v1, %v1459_v39  ;;  %2047 = vrsqrt.f32 %v1296_v15  ;;  %v3261_v47 = vpop.xlane.xlu1 %789  ;;  %v3266_v53 = vpop.xlane.xlu0 %787 }
 0x256   :  { %v2038_v41 = vpop.eup %2037  ;;  %v1529_v13 = vmul.f32 %v3125_v1, %v1458_v28 }
 0x257   :  { %v2040_v40 = vpop.eup %2039  ;;  %v1601_v58 = vadd.f32 %v3134_v61, %v1530_v23  ;;  %v1491_v5 = vmul.f32 %v2038_v41, %v1427_v7 }
 0x258   :  { %v1600_v31 = vadd.f32 %v3134_v61, %v1529_v13  ;;  %v1490_v27 = vmul.f32 %v2040_v40, %v1426_v26 }
 0x259   :  { %1665 = vst [vmem:[#allocation2 + $0xd8] sm:$0xff] %v1601_v58  ;;  %v1562_v57 = vmul.f32 %v3125_v1, %v1491_v5  ;;  %v722_v62 = vpop.xlane.xlu1 %721  ;;  %v720_v37 = vpop.xlane.xlu0 %719 }
 0x25a   :  { %v2042_v8 = vpop.eup %2041  ;;  %1664 = vst [vmem:[#allocation2 + $0xd0] sm:$0xff] %v1600_v31  ;;  %v1561_v0 = vmul.f32 %v3125_v1, %v1490_v27  ;;  %v3294_v21 = vmul.f32 0.010416667, %v722_v62  ;;  %v3299_v19 = vmul.f32 0.010416667, %v720_v37 }
 0x25b   :  { %v2044_v48 = vpop.eup %2043  ;;  %v1633_v54 = vadd.f32 %v3134_v61, %v1562_v57  ;;  %v1457_v38 = vmul.f32 %v2042_v8, %v1393_v49  ;;  %v3311_v57 = vmul.f32 0.010416667, %v3261_v47  ;;  %v3316_v37 = vmul.f32 0.010416667, %v3266_v53 }
 0x25c   :  { %v1632_v55 = vadd.f32 %v3134_v61, %v1561_v0  ;;  %v1456_v17 = vmul.f32 %v2044_v48, %v1392_v29  ;;  %v1141_v28 = vmul.f32 %v3294_v21, %v3294_v21  ;;  %v1140_v13 = vmul.f32 %v3299_v19, %v3299_v19 }
 0x25d   :  { %1697 = vst [vmem:[#allocation2 + $0x1d8] sm:$0xff] %v1633_v54  ;;  %v1528_v34 = vmul.f32 %v3125_v1, %v1457_v38  ;;  %v786_v43 = vpop.xlane.xlu1 %785  ;;  %v784_v60 = vpop.xlane.xlu0 %783  ;;  %v1174_v53 = vmul.f32 %v3316_v37, %v3316_v37 }
 0x25e   :  { %v2046_v63 = vpop.eup %2045  ;;  %1696 = vst [vmem:[#allocation2 + $0x1d0] sm:$0xff] %v1632_v55  ;;  %v1527_v32 = vmul.f32 %v3125_v1, %v1456_v17  ;;  %v3304_v7 = vmul.f32 0.010416667, %v786_v43  ;;  %v3308_v40 = vmul.f32 0.010416667, %v784_v60 }
 0x25f   :  { %v2048_v50 = vpop.eup %2047  ;;  %v1599_v2 = vadd.f32 %v3134_v61, %v1528_v34  ;;  %v1489_v56 = vmul.f32 %v2046_v63, %v1425_v14  ;;  %v1175_v14 = vmul.f32 %v3311_v57, %v3311_v57 }
 0x260   :  { %v1598_v16 = vadd.f32 %v3134_v61, %v1527_v32  ;;  %v1488_v22 = vmul.f32 %v2048_v50, %v1424_v6  ;;  %v1173_v62 = vmul.f32 %v3304_v7, %v3304_v7  ;;  %v1172_v48 = vmul.f32 %v3308_v40, %v3308_v40 }
 0x261   :  { %1663 = vst [vmem:[#allocation2 + $0xc8] sm:$0xff] %v1599_v2  ;;  %v1560_v30 = vmul.f32 %v3125_v1, %v1489_v56  ;;  %v983_v25 = vpop.xlane.xlu1 %982  ;;  %v981_v51 = vpop.xlane.xlu0 %980  ;;  %v1399_v50 = vsub.f32 %v2902_v12, %v3284_v46  ;;  %v1396_v12 = vsub.f32 %v2948_v45, %v3299_v19 }
 0x262   :  { %1662 = vst [vmem:[#allocation2 + $0xc0] sm:$0xff] %v1598_v16  ;;  %v1559_v42 = vmul.f32 %v3125_v1, %v1488_v22  ;;  %v1079_v11 = vmul.f32 0.010416667, %v983_v25  ;;  %v1078_v3 = vmul.f32 0.010416667, %v981_v51  ;;  %v1398_v16 = vsub.f32 %v2913_v35, %v3287_v59 }
 0x263   :  { %v1631_v44 = vadd.f32 %v3134_v61, %v1560_v30 }
 0x264   :  { %v1630_v20 = vadd.f32 %v3134_v61, %v1559_v42  ;;  %v1207_v18 = vsub.f32 %v1079_v11, %v1143_v9  ;;  %v1206_v39 = vsub.f32 %v1078_v3, %v1142_v4  ;;  %v1397_v11 = vsub.f32 %v2936_v33, %v3294_v21 }
 0x265   :  { %1695 = vst [vmem:[#allocation2 + $0x1c8] sm:$0xff] %v1631_v44  ;;  %v979_v15 = vpop.xlane.xlu1 %978  ;;  %v977_v26 = vpop.xlane.xlu0 %976 }
 0x266   :  { %1694 = vst [vmem:[#allocation2 + $0x1c0] sm:$0xff] %v1630_v20  ;;  %v1271_v23 = vadd.f32 1e-05, %v1207_v18  ;;  %v1077_v41 = vmul.f32 0.010416667, %v979_v15  ;;  %v1429_v18 = vsub.f32 %v2956_v24, %v3304_v7  ;;  %v1431_v24 = vsub.f32 %v2923_v10, %v3311_v57 }
 0x267   :  { %v1270_v58 = vadd.f32 1e-05, %v1206_v39  ;;  %v1076_v5 = vmul.f32 0.010416667, %v977_v26  ;;  %v1428_v39 = vsub.f32 %v2965_v36, %v3308_v40  ;;  %v1430_v36 = vsub.f32 %v2932_v52, %v3316_v37 }
 0x268   :  { %2049 = vrsqrt.f32 %v1271_v23  ;;  %v1205_v31 = vsub.f32 %v1077_v41, %v1141_v28 }
 0x269   :  { %2051 = vrsqrt.f32 %v1270_v58  ;;  %v1204_v27 = vsub.f32 %v1076_v5, %v1140_v13  ;;  %v1043_v49 = vpop.xlane.xlu1 %1042  ;;  %v1041_v0 = vpop.xlane.xlu0 %1040 }
 0x26a   :  { %v1269_v8 = vadd.f32 1e-05, %v1205_v31  ;;  %v1109_v29 = vmul.f32 0.010416667, %v1043_v49  ;;  %v1108_v38 = vmul.f32 0.010416667, %v1041_v0 }
 0x26b   :  { %v1268_v54 = vadd.f32 1e-05, %v1204_v27 }
 0x26c   :  { %2053 = vrsqrt.f32 %v1269_v8  ;;  %v1237_v55 = vsub.f32 %v1109_v29, %v1173_v62  ;;  %v1236_v17 = vsub.f32 %v1108_v38, %v1172_v48 }
 0x26d   :  { %2055 = vrsqrt.f32 %v1268_v54  ;;  %v1047_v47 = vpop.xlane.xlu1 %1046  ;;  %v1045_v63 = vpop.xlane.xlu0 %1044 }
 0x26e   :  { %v1301_v34 = vadd.f32 1e-05, %v1237_v55  ;;  %v1111_v43 = vmul.f32 0.010416667, %v1047_v47  ;;  %v1300_v6 = vadd.f32 1e-05, %v1236_v17 }
 0x26f   :  { %v1110_v32 = vmul.f32 0.010416667, %v1045_v63 }
 0x270   :  { %2057 = vrsqrt.f32 %v1301_v34  ;;  %v1239_v60 = vsub.f32 %v1111_v43, %v1175_v14 }
 0x271   :  { %2059 = vrsqrt.f32 %v1300_v6  ;;  %v1238_v2 = vsub.f32 %v1110_v32, %v1174_v53 }
 0x272   :  { %v2050_v56 = vpop.eup %2049  ;;  %v1303_v22 = vadd.f32 1e-05, %v1239_v60 }
 0x273   :  { %v2052_v30 = vpop.eup %2051  ;;  %v1463_v25 = vmul.f32 %v2050_v56, %v1399_v50  ;;  %v1302_v42 = vadd.f32 1e-05, %v1238_v2 }
 0x274   :  { %v1462_v9 = vmul.f32 %v2052_v30, %v1398_v16  ;;  %2061 = vrsqrt.f32 %v1303_v22 }
 0x275   :  { %v1534_v51 = vmul.f32 %v3125_v1, %v1463_v25  ;;  %2063 = vrsqrt.f32 %v1302_v42 }
 0x276   :  { %v2054_v44 = vpop.eup %2053  ;;  %v1533_v46 = vmul.f32 %v3125_v1, %v1462_v9 }
 0x277   :  { %v2056_v4 = vpop.eup %2055  ;;  %v1605_v35 = vadd.f32 %v3134_v61, %v1534_v51  ;;  %v1461_v59 = vmul.f32 %v2054_v44, %v1397_v11 }
 0x278   :  { %v1604_v3 = vadd.f32 %v3134_v61, %v1533_v46  ;;  %v1460_v20 = vmul.f32 %v2056_v4, %v1396_v12 }
 0x279   :  { %1669 = vst [vmem:[#allocation2 + $0xf8] sm:$0xff] %v1605_v35  ;;  %v1532_v33 = vmul.f32 %v3125_v1, %v1461_v59 }
 0x27a   :  { %v2058_v21 = vpop.eup %2057  ;;  %1668 = vst [vmem:[#allocation2 + $0xf0] sm:$0xff] %v1604_v3  ;;  %v1531_v45 = vmul.f32 %v3125_v1, %v1460_v20 }
 0x27b   :  { %v2060_v19 = vpop.eup %2059  ;;  %v1603_v15 = vadd.f32 %v3134_v61, %v1532_v33  ;;  %v1493_v28 = vmul.f32 %v2058_v21, %v1429_v18 }
 0x27c   :  { %v1602_v23 = vadd.f32 %v3134_v61, %v1531_v45  ;;  %v1492_v41 = vmul.f32 %v2060_v19, %v1428_v39 }
 0x27d   :  { %1667 = vst [vmem:[#allocation2 + $0xe8] sm:$0xff] %v1603_v15  ;;  %v1564_v7 = vmul.f32 %v3125_v1, %v1493_v28 }
 0x27e   :  { %v2062_v26 = vpop.eup %2061  ;;  %1666 = vst [vmem:[#allocation2 + $0xe0] sm:$0xff] %v1602_v23  ;;  %v1563_v13 = vmul.f32 %v3125_v1, %v1492_v41 }
 0x27f   :  { %v2064_v40 = vpop.eup %2063  ;;  %v1635_v58 = vadd.f32 %v3134_v61, %v1564_v7  ;;  %v1495_v5 = vmul.f32 %v2062_v26, %v1431_v24 }
 0x280   :  { %v1634_v31 = vadd.f32 %v3134_v61, %v1563_v13  ;;  %v1494_v27 = vmul.f32 %v2064_v40, %v1430_v36 }
 0x281   :  { %1699 = vst [vmem:[#allocation2 + $0x1e8] sm:$0xff] %v1635_v58  ;;  %v1566_v10 = vmul.f32 %v3125_v1, %v1495_v5 }
 0x282   :  { %1698 = vst [vmem:[#allocation2 + $0x1e0] sm:$0xff] %v1634_v31  ;;  %v1565_v49 = vmul.f32 %v3125_v1, %v1494_v27 }
 0x283   :  { %v1637_v52 = vadd.f32 %v3134_v61, %v1566_v10 }
 0x284   :  { %v1636_v57 = vadd.f32 %v3134_v61, %v1565_v49 }
 0x285   :  { %1701 = vst [vmem:[#allocation2 + $0x1f8] sm:$0xff] %v1637_v52 }
 0x286   :  { %1700 = vst [vmem:[#allocation2 + $0x1f0] sm:$0xff] %v1636_v57 }
 0x287   :  { %2079 = shalt.err (!%p2076_p4)
}
 0x288   :  { %s2080_s23 = scalar_lea.hbm %s3373_s5, 8192 }
 0x289   :  { %p2081_p5 = scmp.ne.s32.totalorder %s3373_s5, %s2080_s23  ;;  %p2084_p6 = scmp.lt.u32.totalorder %s2080_s23, %s3373_s5 }
 0x28b   :  { %p2086_p7 = pnand %p2084_p6, %p2081_p5 }
 0x28d   :  { %2089 = shalt.err (!%p2086_p7)
}
 0x28e   :  { %s2093_s1 = smov 128   ;;  %s2094_s28 = smov 8  }
 0x28f   :  { %1713 = dma.vmem_to_hbm [thread:$0]  %s1708_s4, 8192, %s3373_s5, [#allocation3], %s2093_s1, %s2093_s1, %s2094_s28  }
 0x290   :  { %2090 = dma.done.wait [#allocation3], 8192  }
 0x291   :  { %2091 = vsyncadd [#allocation3], 4294959104 }
 0x292   :  { %1717 = vsyncpa [#allocation3], 1 }

</bundles_post_ra>
